<compile_context>
chip_gen: v7x
topology: tpu7x:2x2x1
jax: 0.10.0
libtpu: 0.0.40
codegen_flags: <defaults>
</compile_context>

<pallas_src>
import functools
import math

import jax
import jax.numpy as jnp
from jax.experimental import pallas as pl
from jax.experimental.pallas import tpu as pltpu


def _srl32(x, n):
    """Logical right shift for int32 (arithmetic shift + mask of sign-fill bits)."""
    return jnp.bitwise_and(jnp.right_shift(x, n), jnp.int32((1 << (32 - n)) - 1))


def _fmix32(x):
    """murmur3 32-bit finalizer: bijective, well-mixed bits (int32 wraparound)."""
    x = x ^ _srl32(x, 16)
    x = x * jnp.int32(-2048144789)   # 0x85EBCA6B
    x = x ^ _srl32(x, 13)
    x = x * jnp.int32(-1028477387)   # 0xC2B2AE35
    x = x ^ _srl32(x, 16)
    return x


def _uniform01(shape, base):
    """Stateless per-element uniforms in [0, 1) from a scalar int32 base."""
    _, s1, s2 = shape
    g = jax.lax.broadcasted_iota(jnp.int32, shape, 0)
    r = jax.lax.broadcasted_iota(jnp.int32, shape, 1)
    c = jax.lax.broadcasted_iota(jnp.int32, shape, 2)
    lin = g * (s1 * s2) + r * s2 + c          # unique linear index per element
    x = _fmix32(base + lin)
    mant = jnp.bitwise_and(x, jnp.int32((1 << 23) - 1))
    return mant.astype(jnp.float32) * jnp.float32(1.0 / (1 << 23))


def _attn_kernel(seed_ref, q_ref, k_ref, v_ref, mask_ref, o_ref, *, drop_p):
    step = pl.program_id(0)
    G, S, D = q_ref.shape

    scale = 1.0 / math.sqrt(D)
    # Fold 1/sqrt(D) into q (S*D elements) and cast to bf16 for the MXU.
    q = (q_ref[...] * scale).astype(jnp.bfloat16)        # (G, S, D)
    k = k_ref[...].astype(jnp.bfloat16)                  # (G, S, D)

    qk = jnp.einsum("gqd,gkd->gqk", q, k,
                    preferred_element_type=jnp.float32)  # (G, S, S) f32
    qk = qk + mask_ref[...][None, :, :]

    # Numerically stable softmax over the last axis.
    qk_max = jnp.max(qk, axis=-1, keepdims=True)
    p = jnp.exp(qk - qk_max)
    denom = jnp.sum(p, axis=-1, keepdims=True)           # (G, S, 1)

    if drop_p > 0.0:
        # dropout(p, train=True): keep w.p. (1-p), rescale kept values by 1/(1-p).
        # The 1/(1-p) rescale is folded into the per-row reciprocal.
        inv = (1.0 / (1.0 - drop_p)) / denom
        base = (seed_ref[0] * jnp.int32(-1640531527)      # per-seed stream split
                + step * jnp.int32(G * S * S))            # per-step offset
        u = _uniform01((G, S, S), base)
        attn = jnp.where(u >= drop_p, p * inv, 0.0)
    else:
        attn = p / denom

    out = jnp.einsum("gqk,gkd->gqd",
                     attn.astype(jnp.bfloat16),
                     v_ref[...].astype(jnp.bfloat16),
                     preferred_element_type=jnp.float32)  # (G, S, D) f32
    o_ref[...] = out.astype(o_ref.dtype)


def _pick_heads_per_step(bh, s):
    # Batch a few heads per grid step (amortize per-step overhead, longer DMA
    # pipeline) while keeping the (G,S,S) f32 intermediates comfortably inside
    # the default 32 MiB scoped VMEM (safe on v7x's 64 MiB physical as well).
    for g in (4, 2, 1):
        if bh % g == 0 and g * s * s * 4 * 4 <= 12 * 1024 * 1024:
            return g
    return 1


def sdpa_dropout(query, key, value, attn_mask, *, drop_p=0.1, seed=0,
                 heads_per_step=None):
    """query/key/value: (B, H, S, D) float32; attn_mask: (1, 1, S, S)."""
    B, H, S, D = query.shape
    BH = B * H
    q = query.reshape(BH, S, D)
    k = key.reshape(BH, S, D)
    v = value.reshape(BH, S, D)
    mask = jnp.broadcast_to(attn_mask, (1, 1, S, S)).reshape(S, S)

    G = heads_per_step or _pick_heads_per_step(BH, S)
    assert BH % G == 0, (BH, G)

    seed_arr = jnp.array([seed], dtype=jnp.int32)
    kernel = functools.partial(_attn_kernel, drop_p=float(drop_p))

    grid_spec = pltpu.PrefetchScalarGridSpec(
        num_scalar_prefetch=1,
        grid=(BH // G,),
        in_specs=[
            pl.BlockSpec((G, S, D), lambda h, seed: (h, 0, 0)),
            pl.BlockSpec((G, S, D), lambda h, seed: (h, 0, 0)),
            pl.BlockSpec((G, S, D), lambda h, seed: (h, 0, 0)),
            # Constant block index -> mask is DMA'd once, not re-fetched per step.
            pl.BlockSpec((S, S), lambda h, seed: (0, 0)),
        ],
        out_specs=pl.BlockSpec((G, S, D), lambda h, seed: (h, 0, 0)),
    )

    out = pl.pallas_call(
        kernel,
        out_shape=jax.ShapeDtypeStruct((BH, S, D), query.dtype),
        grid_spec=grid_spec,
        compiler_params=pltpu.CompilerParams(
            # Steps are fully independent (stateless dropout hash), so the head
            # axis can be sharded across TensorCores on v7x megacore.
            dimension_semantics=("parallel",),
        ),
    )(seed_arr, q, k, v, mask)

    return out.reshape(B, H, S, D)


if __name__ == "__main__":
    # Small shapes consistent with the module (original: B=1, H=8, S=512, D=128).
    B, H, S, D = 1, 4, 128, 128
    root = jax.random.PRNGKey(0)
    k1, k2, k3, k4 = jax.random.split(root, 4)
    query = jax.random.normal(k1, (B, H, S, D), dtype=jnp.float32)
    key_ = jax.random.normal(k2, (B, H, S, D), dtype=jnp.float32)
    value = jax.random.normal(k3, (B, H, S, D), dtype=jnp.float32)
    attn_mask = jax.random.normal(k4, (1, 1, S, S), dtype=jnp.float32)

    # 1) Deterministic path (dropout disabled) vs. pure-JAX reference
    #    (bf16 matmuls -> compare with a tolerance, not bit-exactly).
    out_nodrop = sdpa_dropout(query, key_, value, attn_mask, drop_p=0.0)
    jax.block_until_ready(out_nodrop)
    logits = jnp.einsum("bhqd,bhkd->bhqk", query, key_) / math.sqrt(D) + attn_mask
    ref = jnp.einsum("bhqk,bhkd->bhqd", jax.nn.softmax(logits, axis=-1), value)
    max_err = float(jnp.max(jnp.abs(out_nodrop - ref)))
    assert max_err < 1e-1, f"no-dropout mismatch: max abs err={max_err}"

    # 2) Full forward as in the module: dropout p=0.1, train=True.
    out = sdpa_dropout(query, key_, value, attn_mask, drop_p=0.1, seed=0)
    jax.block_until_ready(out)
    assert out.shape == (B, H, S, D)
    assert bool(jnp.all(jnp.isfinite(out)))
    # Dropout should actually perturb the output (catches a broken keep-mask).
    assert float(jnp.max(jnp.abs(out - out_nodrop))) > 1e-3

    print("KERNEL_OK")
</pallas_src>

<mosaic_0001>
module attributes {stable_mosaic.version = 11 : i64} {
  func.func @_attn_kernel(%arg0: i32, %arg1: memref<1xi32, #tpu.memory_space<smem>>, %arg2: memref<4x128x128xf32, #tpu.memory_space<vmem>>, %arg3: memref<4x128x128xf32, #tpu.memory_space<vmem>>, %arg4: memref<4x128x128xf32, #tpu.memory_space<vmem>>, %arg5: memref<128x128xf32, #tpu.memory_space<vmem>>, %arg6: memref<4x128x128xf32, #tpu.memory_space<vmem>>) attributes {dimension_semantics = [#tpu.dimension_semantics<parallel>], iteration_bounds = array<i64: 1>, scalar_prefetch = 1 : i64, scratch_operands = 0 : i64, tpu.core_type = #tpu.core_type<tc>, window_params = [{transform_indices = @transform_0, window_bounds = array<i64: 4, 128, 128>}, {transform_indices = @transform_1, window_bounds = array<i64: 4, 128, 128>}, {transform_indices = @transform_2, window_bounds = array<i64: 4, 128, 128>}, {pipeline_mode = #tpu.pipeline_mode<synchronous>, transform_indices = @transform_3, window_bounds = array<i64: 128, 128>}, {transform_indices = @transform_4, window_bounds = array<i64: 4, 128, 128>}]} {
    %c0 = arith.constant 0 : index
    %c0_0 = arith.constant 0 : index
    %c0_1 = arith.constant 0 : index
    %0 = vector.load %arg2[%c0, %c0_0, %c0_1] : memref<4x128x128xf32, #tpu.memory_space<vmem>>, vector<4x128x128xf32>
    %cst = arith.constant 0.0883883461 : f32
    %1 = vector.broadcast %cst : f32 to vector<4x128x128xf32>
    %2 = arith.mulf %0, %1 : vector<4x128x128xf32>
    %3 = arith.truncf %2 : vector<4x128x128xf32> to vector<4x128x128xbf16>
    %c0_2 = arith.constant 0 : index
    %c0_3 = arith.constant 0 : index
    %c0_4 = arith.constant 0 : index
    %4 = vector.load %arg3[%c0_2, %c0_3, %c0_4] : memref<4x128x128xf32, #tpu.memory_space<vmem>>, vector<4x128x128xf32>
    %5 = arith.truncf %4 : vector<4x128x128xf32> to vector<4x128x128xbf16>
    "tpu.trace_start"() <{level = 10 : i32, message = "gqd,gkd->gqk"}> : () -> ()
    %cst_5 = arith.constant dense<0.000000e+00> : vector<4x128x128xf32>
    %6 = tpu.matmul %3, %5, %cst_5 {dimension_numbers = #tpu.dot_dimension_numbers<[2], [2], [1], [1], [0, 0, 0, 1, 1, 1], [0], [0]>} : vector<4x128x128xbf16>, vector<4x128x128xbf16>, vector<4x128x128xf32> -> vector<4x128x128xf32>
    "tpu.trace_stop"() : () -> ()
    %c0_6 = arith.constant 0 : index
    %c0_7 = arith.constant 0 : index
    %7 = vector.load %arg5[%c0_6, %c0_7] : memref<128x128xf32, #tpu.memory_space<vmem>>, vector<128x128xf32>
    %8 = vector.shape_cast %7 : vector<128x128xf32> to vector<1x128x128xf32>
    %9 = vector.broadcast %8 : vector<1x128x128xf32> to vector<4x128x128xf32>
    %10 = arith.addf %6, %9 : vector<4x128x128xf32>
    %cst_8 = arith.constant dense<0xFF800000> : vector<4x128xf32>
    %11 = vector.multi_reduction <maximumf>, %10, %cst_8 [2] : vector<4x128x128xf32> to vector<4x128xf32>
    %12 = vector.shape_cast %11 : vector<4x128xf32> to vector<4x128x1xf32>
    %13 = vector.broadcast %12 : vector<4x128x1xf32> to vector<4x128x128xf32>
    %14 = arith.subf %10, %13 : vector<4x128x128xf32>
    %15 = math.exp %14 : vector<4x128x128xf32>
    %cst_9 = arith.constant dense<0.000000e+00> : vector<4x128xf32>
    %16 = vector.multi_reduction <add>, %15, %cst_9 [2] : vector<4x128x128xf32> to vector<4x128xf32>
    %17 = vector.shape_cast %16 : vector<4x128xf32> to vector<4x128x1xf32>
    %18 = vector.broadcast %17 : vector<4x128x1xf32> to vector<4x128x128xf32>
    %19 = arith.divf %15, %18 : vector<4x128x128xf32>
    %20 = arith.truncf %19 : vector<4x128x128xf32> to vector<4x128x128xbf16>
    %c0_10 = arith.constant 0 : index
    %c0_11 = arith.constant 0 : index
    %c0_12 = arith.constant 0 : index
    %21 = vector.load %arg4[%c0_10, %c0_11, %c0_12] : memref<4x128x128xf32, #tpu.memory_space<vmem>>, vector<4x128x128xf32>
    %22 = arith.truncf %21 : vector<4x128x128xf32> to vector<4x128x128xbf16>
    "tpu.trace_start"() <{level = 10 : i32, message = "gqk,gkd->gqd"}> : () -> ()
    %cst_13 = arith.constant dense<0.000000e+00> : vector<4x128x128xf32>
    %23 = tpu.matmul %20, %22, %cst_13 {dimension_numbers = #tpu.dot_dimension_numbers<[2], [1], [1], [2], [0, 0, 0, 1, 1, 2], [0], [0]>} : vector<4x128x128xbf16>, vector<4x128x128xbf16>, vector<4x128x128xf32> -> vector<4x128x128xf32>
    "tpu.trace_stop"() : () -> ()
    %c0_14 = arith.constant 0 : index
    %c0_15 = arith.constant 0 : index
    %c0_16 = arith.constant 0 : index
    %24 = vector.load %arg6[%c0_14, %c0_15, %c0_16] : memref<4x128x128xf32, #tpu.memory_space<vmem>>, vector<4x128x128xf32>
    tpu.vector_store %arg6[%c0_14, %c0_15, %c0_16], %23 {strides = array<i32>} : memref<4x128x128xf32, #tpu.memory_space<vmem>>, vector<4x128x128xf32>,
    return
  }
  func.func @transform_0(%arg0: i32, %arg1: memref<1xi32, #tpu.memory_space<smem>>) -> (i32, i32, i32) {
    %c0_i32 = arith.constant 0 : i32
    %c0_i32_0 = arith.constant 0 : i32
    %c0_i32_1 = arith.constant 0 : i32
    return %arg0, %c0_i32, %c0_i32_0 : i32, i32, i32
  }
  func.func @transform_1(%arg0: i32, %arg1: memref<1xi32, #tpu.memory_space<smem>>) -> (i32, i32, i32) {
    %c0_i32 = arith.constant 0 : i32
    %c0_i32_0 = arith.constant 0 : i32
    %c0_i32_1 = arith.constant 0 : i32
    return %arg0, %c0_i32, %c0_i32_0 : i32, i32, i32
  }
  func.func @transform_2(%arg0: i32, %arg1: memref<1xi32, #tpu.memory_space<smem>>) -> (i32, i32, i32) {
    %c0_i32 = arith.constant 0 : i32
    %c0_i32_0 = arith.constant 0 : i32
    %c0_i32_1 = arith.constant 0 : i32
    return %arg0, %c0_i32, %c0_i32_0 : i32, i32, i32
  }
  func.func @transform_3(%arg0: i32, %arg1: memref<1xi32, #tpu.memory_space<smem>>) -> (i32, i32) {
    %c0_i32 = arith.constant 0 : i32
    %c0_i32_0 = arith.constant 0 : i32
    %c0_i32_1 = arith.constant 0 : i32
    return %c0_i32, %c0_i32_0 : i32, i32
  }
  func.func @transform_4(%arg0: i32, %arg1: memref<1xi32, #tpu.memory_space<smem>>) -> (i32, i32, i32) {
    %c0_i32 = arith.constant 0 : i32
    %c0_i32_0 = arith.constant 0 : i32
    %c0_i32_1 = arith.constant 0 : i32
    return %arg0, %c0_i32, %c0_i32_0 : i32, i32, i32
  }
}

</mosaic_0001>

<bundles_post_ra>
// kernel: tpu_custom_call.1
= control target key start
LH: loop header
LB: loop body
LE: loop exit
PB: predicated region body
PF: predicated region fallthrough
CT: control target
= control target key end

     0   :  { %11 = vsyncpa [#allocation5], 0  ;;  %s3424_s0 = inlined_call_operand.<no memory space> [shape: s32[1], index: 0, kind: input, shape index: {}]   ;;  %s3425_s1 = inlined_call_operand.hbm [shape: f32[4,128,128], index: 1, kind: input, shape index: {}]   ;;  %s3426_s2 = inlined_call_operand.hbm [shape: f32[4,128,128], index: 2, kind: input, shape index: {}]   ;;  %s3427_s3 = inlined_call_operand.hbm [shape: f32[4,128,128], index: 3, kind: input, shape index: {}]   ;;  %s3428_s4 = inlined_call_operand.hbm [shape: f32[128,128], index: 4, kind: input, shape index: {}]   ;;  %s3429_s5 = inlined_call_operand.hbm [shape: f32[4,128,128], index: 5, kind: output, shape index: {}]  }
   0x1   :  { %12 = vsyncpa [#allocation8], 0 }
   0x2   :  { %13 = vsyncpa [#allocation11], 0 }
   0x3   :  { %14 = vsyncpa [#allocation6], 0  ;;  %s2676_s0 = smov [#allocation7]   ;;  %s2677_s19 = smov [#allocation4]  }
   0x4   :  { %s32_s18 = sshll.u32 %s2676_s0, 4  ;;  %s20_s20 = sshll.u32 %s2677_s19, 4  ;;  %s33_s18 = int_to_ptr.vmem [resolvable:$true] %s32_s18  ;;  %s2713_s20 = int_to_ptr.vmem [resolvable:$true] %s20_s20 }
   0x5   :  { %s2558_s23 = scalar_lea.hbm %s3426_s2, 8192 }
   0x6   :  { %p2559_p0 = scmp.ne.s32.totalorder %s3426_s2, %s2558_s23  ;;  %p2562_p1 = scmp.lt.u32.totalorder %s2558_s23, %s3426_s2 }
   0x8   :  { %p2564_p2 = pnand %p2562_p1, %p2559_p0 }
   0xa   :  { %2567 = shalt.err (!%p2564_p2)
}
   0xb   :  { %s2568_s28 = scalar_lea.vmem %s33_s18, 8192  ;;  %p2573_p4 = scmp.lt.s32.totalorder %s33_s18, %s33_s18 }
   0xc   :  { %p2569_p3 = scmp.ne.s32.totalorder %s33_s18, %s2568_s28  ;;  %p2574_p5 = scmp.lt.s32.totalorder %s2568_s28, %s2568_s28 }
   0xe   :  { %p2575_p6 = por %p2574_p5, %p2573_p4 }
  0x10   :  { %p2576_p7 = pnand %p2575_p6, %p2569_p3 }
  0x12   :  { %2579 = shalt.err (!%p2576_p7)
}
  0x13   :  { %s2678_s29 = smov 128   ;;  %s2679_s30 = smov 8  }
  0x14   :  { %38 = dma.hbm_to_vmem [thread:$0]  %s3426_s2, 8192, %s33_s18, [#allocation8], %s2678_s29, %s2678_s29, %s2679_s30  }
  0x15   :  { %s2580_s10 = scalar_lea.hbm %s3425_s1, 8192 }
  0x16   :  { %p2581_p8 = scmp.ne.s32.totalorder %s3425_s1, %s2580_s10  ;;  %p2584_p9 = scmp.lt.u32.totalorder %s2580_s10, %s3425_s1 }
  0x18   :  { %p2586_p10 = pnand %p2584_p9, %p2581_p8 }
  0x1a   :  { %2589 = shalt.err (!%p2586_p10)
}
  0x1b   :  { %s2590_s15 = scalar_lea.vmem %s2713_s20, 8192  ;;  %p2595_p12 = scmp.lt.s32.totalorder %s2713_s20, %s2713_s20 }
  0x1c   :  { %p2591_p11 = scmp.ne.s32.totalorder %s2713_s20, %s2590_s15  ;;  %p2596_p13 = scmp.lt.s32.totalorder %s2590_s15, %s2590_s15 }
  0x1e   :  { %p2597_p0 = por %p2596_p13, %p2595_p12 }
  0x20   :  { %p2598_p1 = pnand %p2597_p0, %p2591_p11 }
  0x22   :  { %2601 = shalt.err (!%p2598_p1)
}
  0x23   :  { %26 = dma.hbm_to_vmem [thread:$0]  %s3425_s1, 8192, %s2713_s20, [#allocation5], %s2678_s29, %s2678_s29, %s2679_s30  }
  0x24   :  { %s2680_s17 = smov [#allocation9]   ;;  %s2681_s18 = smov [#allocation10]  }
  0x25   :  { %s44_s0 = sshll.u32 %s2680_s17, 4  ;;  %s56_s19 = sshll.u32 %s2681_s18, 4  ;;  %s45_s0 = int_to_ptr.vmem [resolvable:$true] %s44_s0  ;;  %s2750_s19 = int_to_ptr.vmem [resolvable:$true] %s56_s19 }
  0x26   :  { %s2602_s23 = scalar_lea.hbm %s3427_s3, 8192 }
  0x27   :  { %p2603_p2 = scmp.ne.s32.totalorder %s3427_s3, %s2602_s23  ;;  %p2606_p3 = scmp.lt.u32.totalorder %s2602_s23, %s3427_s3 }
  0x29   :  { %p2608_p4 = pnand %p2606_p3, %p2603_p2 }
  0x2b   :  { %2611 = shalt.err (!%p2608_p4)
}
  0x2c   :  { %s2612_s1 = scalar_lea.vmem %s45_s0, 8192  ;;  %p2617_p6 = scmp.lt.s32.totalorder %s45_s0, %s45_s0 }
  0x2d   :  { %p2613_p5 = scmp.ne.s32.totalorder %s45_s0, %s2612_s1  ;;  %p2618_p7 = scmp.lt.s32.totalorder %s2612_s1, %s2612_s1 }
  0x2f   :  { %p2619_p8 = por %p2618_p7, %p2617_p6 }
  0x31   :  { %p2620_p9 = pnand %p2619_p8, %p2613_p5 }
  0x33   :  { %2623 = shalt.err (!%p2620_p9)
}
  0x34   :  { %50 = dma.hbm_to_vmem [thread:$0]  %s3427_s3, 8192, %s45_s0, [#allocation8], %s2678_s29, %s2678_s29, %s2679_s30  }
  0x35   :  { %s2624_s8 = scalar_lea.hbm %s3428_s4, 2048 }
  0x36   :  { %p2625_p10 = scmp.ne.s32.totalorder %s3428_s4, %s2624_s8  ;;  %p2628_p11 = scmp.lt.u32.totalorder %s2624_s8, %s3428_s4 }
  0x38   :  { %p2630_p12 = pnand %p2628_p11, %p2625_p10 }
  0x3a   :  { %2633 = shalt.err (!%p2630_p12)
}
  0x3b   :  { %s2634_s13 = scalar_lea.vmem %s2750_s19, 2048  ;;  %p2639_p0 = scmp.lt.s32.totalorder %s2750_s19, %s2750_s19 }
  0x3c   :  { %p2635_p13 = scmp.ne.s32.totalorder %s2750_s19, %s2634_s13  ;;  %p2640_p1 = scmp.lt.s32.totalorder %s2634_s13, %s2634_s13 }
  0x3e   :  { %p2641_p2 = por %p2640_p1, %p2639_p0 }
  0x40   :  { %p2642_p3 = pnand %p2641_p2, %p2635_p13 }
  0x42   :  { %2645 = shalt.err (!%p2642_p3)
}
  0x43   :  { %62 = dma.hbm_to_vmem [thread:$0]  %s3428_s4, 2048, %s2750_s19, [#allocation11], %s2678_s29, %s2678_s29, %s2679_s30  }
  0x44   :  { %2668 = dma.done.wait [#allocation5], 8192  }
  0x45   :  { %2669 = vsyncadd [#allocation5], 4294959104 }
  0x46   :  { %2670 = dma.done.wait [#allocation8], 16384  }
  0x47   :  { %2671 = vsyncadd [#allocation8], 4294950912 }
  0x48   :  { %2672 = dma.done.wait [#allocation11], 2048  }
  0x49   :  { %2673 = vsyncadd [#allocation11], 4294965248  ;;  %v236_v0 = vld [vmem:[#allocation7] sm:$0xff]  ;;  %v237_v1 = vld [vmem:[#allocation7 + $0x8] sm:$0xff]  ;;  %s2682_s4 = smov [#allocation12]  }
  0x4a   :  { %v252_v2 = vld [vmem:[#allocation7 + $0x80] sm:$0xff]  ;;  %v300_v3 = vpack.c.bf16 %v237_v1, %v236_v0  ;;  %v253_v4 = vld [vmem:[#allocation7 + $0x88] sm:$0xff]  ;;  %v238_v5 = vld [vmem:[#allocation7 + $0x10] sm:$0xff]  ;;  %s1897_s15 = sshll.u32 %s2682_s4, 4  ;;  %s1898_s15 = int_to_ptr.vmem [resolvable:$true] %s1897_s15 }
  0x4b   :  { %v239_v6 = vld [vmem:[#allocation7 + $0x18] sm:$0xff]  ;;  %v308_v7 = vpack.c.bf16 %v253_v4, %v252_v2  ;;  %v254_v9 = vld [vmem:[#allocation7 + $0x90] sm:$0xff]  ;;  %v240_v12 = vld [vmem:[#allocation7 + $0x20] sm:$0xff]  ;;  %s2646_s2 = scalar_lea.vmem %s1898_s15, 8192  ;;  %p2651_p5 = scmp.lt.s32.totalorder %s1898_s15, %s1898_s15 }
  0x4c   :  { %v301_v8 = vpack.c.bf16 %v239_v6, %v238_v5  ;;  %v255_v10 = vld [vmem:[#allocation7 + $0x98] sm:$0xff]  ;;  %2039 = vmatprep.subr.bf16.mxu0 %v300_v3  ;;  %v241_v13 = vld [vmem:[#allocation7 + $0x28] sm:$0xff]  ;;  %v256_v14 = vld [vmem:[#allocation7 + $0xa0] sm:$0xff]  ;;  %p2647_p4 = scmp.ne.s32.totalorder %s1898_s15, %s2646_s2  ;;  %p2652_p6 = scmp.lt.s32.totalorder %s2646_s2, %s2646_s2 }
  0x4d   :  { %v309_v11 = vpack.c.bf16 %v255_v10, %v254_v9  ;;  %2071 = vmatprep.subr.bf16.mxu1 %v308_v7  ;;  %2040 = vmatpush3.bf16.xpose.msra.mxu0 %v300_v3  ;;  %v257_v15 = vld [vmem:[#allocation7 + $0xa8] sm:$0xff]  ;;  %v302_v16 = vpack.c.bf16 %v241_v13, %v240_v12  ;;  %v76_v18 = vld [vmem:[#allocation4] sm:$0xff]  ;;  %v242_v26 = vld [vmem:[#allocation7 + $0x30] sm:$0xff] }
  0x4e   :  { %2072 = vmatpush3.bf16.xpose.msra.mxu1 %v308_v7  ;;  %2041 = vmatprep.subr.bf16.mxu0 %v301_v8  ;;  %v310_v17 = vpack.c.bf16 %v257_v15, %v256_v14  ;;  %v77_v19 = vld [vmem:[#allocation4 + $0x8] sm:$0xff]  ;;  %v140_v20 = vmul.f32 0.088388346, %v76_v18  ;;  %v92_v21 = vld [vmem:[#allocation4 + $0x80] sm:$0xff]  ;;  %v243_v27 = vld [vmem:[#allocation7 + $0x38] sm:$0xff]  ;;  %p2653_p7 = por %p2652_p6, %p2651_p5 }
  0x4f   :  { %2073 = vmatprep.subr.bf16.mxu1 %v309_v11  ;;  %v93_v22 = vld [vmem:[#allocation4 + $0x88] sm:$0xff]  ;;  %v141_v23 = vmul.f32 0.088388346, %v77_v19  ;;  %v156_v24 = vmul.f32 0.088388346, %v92_v21  ;;  %v258_v30 = vld [vmem:[#allocation7 + $0xb0] sm:$0xff]  ;;  %v303_v32 = vpack.c.bf16 %v243_v27, %v242_v26 }
  0x50   :  { %v157_v25 = vmul.f32 0.088388346, %v93_v22  ;;  %v259_v31 = vld [vmem:[#allocation7 + $0xb8] sm:$0xff]  ;;  %v244_v34 = vld [vmem:[#allocation7 + $0x40] sm:$0xff]  ;;  %v245_v35 = vld [vmem:[#allocation7 + $0x48] sm:$0xff]  ;;  %p2654_p8 = pnand %p2653_p7, %p2647_p4 }
  0x51   :  { %v204_v28 = vpack.c.bf16 %v141_v23, %v140_v20  ;;  %v311_v33 = vpack.c.bf16 %v259_v31, %v258_v30  ;;  %v260_v36 = vld [vmem:[#allocation7 + $0xc0] sm:$0xff]  ;;  %v261_v37 = vld [vmem:[#allocation7 + $0xc8] sm:$0xff]  ;;  %v304_v38 = vpack.c.bf16 %v245_v35, %v244_v34  ;;  %v246_v40 = vld [vmem:[#allocation7 + $0x50] sm:$0xff] }
  0x52   :  { %v212_v29 = vpack.c.bf16 %v157_v25, %v156_v24  ;;  %v312_v39 = vpack.c.bf16 %v261_v37, %v260_v36  ;;  %v247_v41 = vld [vmem:[#allocation7 + $0x58] sm:$0xff]  ;;  %v262_v42 = vld [vmem:[#allocation7 + $0xd0] sm:$0xff]  ;;  %v248_v46 = vld [vmem:[#allocation7 + $0x60] sm:$0xff] }
  0x53   :  { %2055 = vmatprep.mubr.bf16.mxu0 %v204_v28  ;;  %v263_v43 = vld [vmem:[#allocation7 + $0xd8] sm:$0xff]  ;;  %v305_v44 = vpack.c.bf16 %v247_v41, %v246_v40  ;;  %v249_v47 = vld [vmem:[#allocation7 + $0x68] sm:$0xff]  ;;  %v264_v48 = vld [vmem:[#allocation7 + $0xe0] sm:$0xff] }
  0x54   :  { %2087 = vmatprep.mubr.bf16.mxu1 %v212_v29  ;;  %v313_v45 = vpack.c.bf16 %v263_v43, %v262_v42  ;;  %v265_v49 = vld [vmem:[#allocation7 + $0xe8] sm:$0xff]  ;;  %v306_v50 = vpack.c.bf16 %v249_v47, %v248_v46  ;;  %v250_v52 = vld [vmem:[#allocation7 + $0x70] sm:$0xff]  ;;  %v251_v53 = vld [vmem:[#allocation7 + $0x78] sm:$0xff] }
  0x55   :  { %2042 = vmatpush3.bf16.xpose.msra.mxu0 %v301_v8  ;;  %v314_v51 = vpack.c.bf16 %v265_v49, %v264_v48  ;;  %v266_v54 = vld [vmem:[#allocation7 + $0xf0] sm:$0xff]  ;;  %v267_v55 = vld [vmem:[#allocation7 + $0xf8] sm:$0xff]  ;;  %v307_v56 = vpack.c.bf16 %v251_v53, %v250_v52  ;;  %v268_v58 = vld [vmem:[#allocation7 + $0x100] sm:$0xff] }
  0x56   :  { %2074 = vmatpush3.bf16.xpose.msra.mxu1 %v309_v11  ;;  %2043 = vmatprep.subr.bf16.mxu0 %v302_v16  ;;  %v315_v57 = vpack.c.bf16 %v267_v55, %v266_v54  ;;  %v269_v59 = vld [vmem:[#allocation7 + $0x108] sm:$0xff]  ;;  %v284_v60 = vld [vmem:[#allocation7 + $0x180] sm:$0xff]  ;;  %v78_v62 = vld [vmem:[#allocation4 + $0x10] sm:$0xff] }
  0x57   :  { %2075 = vmatprep.subr.bf16.mxu1 %v310_v17  ;;  %v285_v61 = vld [vmem:[#allocation7 + $0x188] sm:$0xff]  ;;  %v79_v63 = vld [vmem:[#allocation4 + $0x18] sm:$0xff]  ;;  %v94_v0 = vld [vmem:[#allocation4 + $0x90] sm:$0xff]  ;;  %v316_v2 = vpack.c.bf16 %v269_v59, %v268_v58  ;;  %v142_v4 = vmul.f32 0.088388346, %v78_v62 }
  0x58   :  { %v95_v1 = vld [vmem:[#allocation4 + $0x98] sm:$0xff]  ;;  %v324_v3 = vpack.c.bf16 %v285_v61, %v284_v60  ;;  %v143_v5 = vmul.f32 0.088388346, %v79_v63  ;;  %v80_v6 = vld [vmem:[#allocation4 + $0x20] sm:$0xff]  ;;  %v81_v7 = vld [vmem:[#allocation4 + $0x28] sm:$0xff] }
  0x59   :  { %v158_v8 = vmul.f32 0.088388346, %v94_v0  ;;  %v159_v9 = vmul.f32 0.088388346, %v95_v1  ;;  %v96_v10 = vld [vmem:[#allocation4 + $0xa0] sm:$0xff]  ;;  %v97_v11 = vld [vmem:[#allocation4 + $0xa8] sm:$0xff] }
  0x5a   :  { %v270_v12 = vld [vmem:[#allocation7 + $0x110] sm:$0xff]  ;;  %v271_v13 = vld [vmem:[#allocation7 + $0x118] sm:$0xff]  ;;  %v144_v14 = vmul.f32 0.088388346, %v80_v6  ;;  %v145_v15 = vmul.f32 0.088388346, %v81_v7 }
  0x5b   :  { %v287_v18 = vld [vmem:[#allocation7 + $0x198] sm:$0xff]  ;;  %v160_v19 = vmul.f32 0.088388346, %v96_v10  ;;  %v161_v20 = vmul.f32 0.088388346, %v97_v11  ;;  %v213_v21 = vpack.c.bf16 %v159_v9, %v158_v8  ;;  %v82_v22 = vld [vmem:[#allocation4 + $0x30] sm:$0xff]  ;;  %v317_v24 = vpack.c.bf16 %v271_v13, %v270_v12 }
  0x5c   :  { %v83_v23 = vld [vmem:[#allocation4 + $0x38] sm:$0xff]  ;;  %v98_v25 = vld [vmem:[#allocation4 + $0xb0] sm:$0xff]  ;;  %v206_v28 = vpack.c.bf16 %v145_v15, %v144_v14  ;;  %v146_v29 = vmul.f32 0.088388346, %v82_v22  ;;  %v100_v36 = vld [vmem:[#allocation4 + $0xc0] sm:$0xff] }
  0x5d   :  { %2044 = vmatpush3.bf16.xpose.msra.mxu0 %v302_v16  ;;  %v205_v16 = vpack.c.bf16 %v143_v5, %v142_v4  ;;  %v99_v26 = vld [vmem:[#allocation4 + $0xb8] sm:$0xff]  ;;  %v147_v30 = vmul.f32 0.088388346, %v83_v23  ;;  %v214_v31 = vpack.c.bf16 %v161_v20, %v160_v19  ;;  %v162_v34 = vmul.f32 0.088388346, %v98_v25  ;;  %v101_v37 = vld [vmem:[#allocation4 + $0xc8] sm:$0xff] }
  0x5e   :  { %2076 = vmatpush3.bf16.xpose.msra.mxu1 %v310_v17  ;;  %2045 = vmatprep.subr.bf16.mxu0 %v303_v32  ;;  %v286_v17 = vld [vmem:[#allocation7 + $0x190] sm:$0xff]  ;;  %v163_v35 = vmul.f32 0.088388346, %v99_v26  ;;  %v288_v43 = vld [vmem:[#allocation7 + $0x1a0] sm:$0xff]  ;;  %v165_v46 = vmul.f32 0.088388346, %v101_v37 }
  0x5f   :  { %2077 = vmatprep.subr.bf16.mxu1 %v311_v33  ;;  %v325_v27 = vpack.c.bf16 %v287_v18, %v286_v17  ;;  %v207_v42 = vpack.c.bf16 %v147_v30, %v146_v29  ;;  %v86_v48 = vld [vmem:[#allocation4 + $0x50] sm:$0xff]  ;;  %v87_v49 = vld [vmem:[#allocation4 + $0x58] sm:$0xff]  ;;  %v88_v58 = vld [vmem:[#allocation4 + $0x60] sm:$0xff] }
  0x60   :  { %v215_v47 = vpack.c.bf16 %v163_v35, %v162_v34  ;;  %v103_v52 = vld [vmem:[#allocation4 + $0xd8] sm:$0xff]  ;;  %v150_v55 = vmul.f32 0.088388346, %v86_v48  ;;  %v89_v59 = vld [vmem:[#allocation4 + $0x68] sm:$0xff]  ;;  %v104_v62 = vld [vmem:[#allocation4 + $0xe0] sm:$0xff] }
  0x61   :  { %v167_v61 = vmul.f32 0.088388346, %v103_v52  ;;  %v105_v63 = vld [vmem:[#allocation4 + $0xe8] sm:$0xff]  ;;  %v274_v0 = vld [vmem:[#allocation7 + $0x130] sm:$0xff]  ;;  %v275_v1 = vld [vmem:[#allocation7 + $0x138] sm:$0xff] }
  0x62   :  { %v290_v4 = vld [vmem:[#allocation7 + $0x1b0] sm:$0xff]  ;;  %v291_v5 = vld [vmem:[#allocation7 + $0x1b8] sm:$0xff]  ;;  %v168_v7 = vmul.f32 0.088388346, %v104_v62  ;;  %v169_v8 = vmul.f32 0.088388346, %v105_v63  ;;  %v319_v12 = vpack.c.bf16 %v275_v1, %v274_v0 }
  0x63   :  { %v90_v10 = vld [vmem:[#allocation4 + $0x70] sm:$0xff]  ;;  %v91_v11 = vld [vmem:[#allocation4 + $0x78] sm:$0xff]  ;;  %v327_v15 = vpack.c.bf16 %v291_v5, %v290_v4  ;;  %v108_v20 = vld [vmem:[#allocation4 + $0x100] sm:$0xff] }
  0x64   :  { %v106_v13 = vld [vmem:[#allocation4 + $0xf0] sm:$0xff]  ;;  %v107_v14 = vld [vmem:[#allocation4 + $0xf8] sm:$0xff]  ;;  %v154_v17 = vmul.f32 0.088388346, %v90_v10  ;;  %v155_v18 = vmul.f32 0.088388346, %v91_v11  ;;  %v218_v19 = vpack.c.bf16 %v169_v8, %v168_v7 }
  0x65   :  { %2046 = vmatpush3.bf16.xpose.msra.mxu0 %v303_v32  ;;  %v84_v32 = vld [vmem:[#allocation4 + $0x40] sm:$0xff]  ;;  %v170_v22 = vmul.f32 0.088388346, %v106_v13  ;;  %v171_v23 = vmul.f32 0.088388346, %v107_v14  ;;  %v125_v25 = vld [vmem:[#allocation4 + $0x188] sm:$0xff] }
  0x66   :  { %2078 = vmatpush3.bf16.xpose.msra.mxu1 %v311_v33  ;;  %2047 = vmatprep.subr.bf16.mxu0 %v304_v38  ;;  %v85_v33 = vld [vmem:[#allocation4 + $0x48] sm:$0xff]  ;;  %v148_v40 = vmul.f32 0.088388346, %v84_v32  ;;  %v276_v26 = vld [vmem:[#allocation7 + $0x140] sm:$0xff]  ;;  %v211_v32 = vpack.c.bf16 %v155_v18, %v154_v17  ;;  %v189_v34 = vmul.f32 0.088388346, %v125_v25 }
  0x67   :  { %2079 = vmatprep.subr.bf16.mxu1 %v312_v39  ;;  %v149_v41 = vmul.f32 0.088388346, %v85_v33  ;;  %v292_v30 = vld [vmem:[#allocation7 + $0x1c0] sm:$0xff]  ;;  %v219_v35 = vpack.c.bf16 %v171_v23, %v170_v22  ;;  %v282_v52 = vld [vmem:[#allocation7 + $0x170] sm:$0xff]  ;;  %v113_v63 = vld [vmem:[#allocation4 + $0x128] sm:$0xff] }
  0x68   :  { %v296_v48 = vld [vmem:[#allocation7 + $0x1e0] sm:$0xff]  ;;  %v129_v1 = vld [vmem:[#allocation4 + $0x1a8] sm:$0xff]  ;;  %v177_v7 = vmul.f32 0.088388346, %v113_v63  ;;  %v114_v13 = vld [vmem:[#allocation4 + $0x130] sm:$0xff] }
  0x69   :  { %v208_v54 = vpack.c.bf16 %v149_v41, %v148_v40  ;;  %v278_v40 = vld [vmem:[#allocation7 + $0x150] sm:$0xff]  ;;  %v279_v41 = vld [vmem:[#allocation7 + $0x158] sm:$0xff]  ;;  %v112_v62 = vld [vmem:[#allocation4 + $0x120] sm:$0xff]  ;;  %v178_v22 = vmul.f32 0.088388346, %v114_v13 }
  0x6a   :  { %v128_v0 = vld [vmem:[#allocation4 + $0x1a0] sm:$0xff]  ;;  %v115_v14 = vld [vmem:[#allocation4 + $0x138] sm:$0xff] }
  0x6b   :  { %v192_v8 = vmul.f32 0.088388346, %v128_v0  ;;  %v131_v17 = vld [vmem:[#allocation4 + $0x1b8] sm:$0xff]  ;;  %v116_v18 = vld [vmem:[#allocation4 + $0x140] sm:$0xff]  ;;  %v179_v23 = vmul.f32 0.088388346, %v115_v14 }
  0x6c   :  { %v195_v25 = vmul.f32 0.088388346, %v131_v17  ;;  %v2787_v0 = vld [vmem:[#allocation10 + $0x10] sm:$0xff] }
  0x6d   :  { %2048 = vmatpush3.bf16.xpose.msra.mxu0 %v304_v38  ;;  %v272_v38 = vld [vmem:[#allocation7 + $0x120] sm:$0xff] }
  0x6e   :  { %2080 = vmatpush3.bf16.xpose.msra.mxu1 %v312_v39  ;;  %2049 = vmatprep.subr.bf16.mxu0 %v305_v44  ;;  %v273_v39 = vld [vmem:[#allocation7 + $0x128] sm:$0xff] }
  0x6f   :  { %2081 = vmatprep.subr.bf16.mxu1 %v313_v45 }
  0x75   :  { %2050 = vmatpush3.bf16.xpose.msra.mxu0 %v305_v44  ;;  %v289_v44 = vld [vmem:[#allocation7 + $0x1a8] sm:$0xff] }
  0x76   :  { %2082 = vmatpush3.bf16.xpose.msra.mxu1 %v313_v45  ;;  %2051 = vmatprep.subr.bf16.mxu0 %v306_v50  ;;  %v164_v45 = vmul.f32 0.088388346, %v100_v36  ;;  %v326_v53 = vpack.c.bf16 %v289_v44, %v288_v43  ;;  %v295_v43 = vld [vmem:[#allocation7 + $0x1d8] sm:$0xff]  ;;  %v321_v44 = vpack.c.bf16 %v279_v41, %v278_v40  ;;  %v136_v40 = vld [vmem:[#allocation4 + $0x1e0] sm:$0xff]  ;;  %v137_v41 = vld [vmem:[#allocation4 + $0x1e8] sm:$0xff] }
  0x77   :  { %2083 = vmatprep.subr.bf16.mxu1 %v314_v51 }
  0x7d   :  { %2052 = vmatpush3.bf16.xpose.msra.mxu0 %v306_v50  ;;  %v318_v50 = vpack.c.bf16 %v273_v39, %v272_v38 }
  0x7e   :  { %2084 = vmatpush3.bf16.xpose.msra.mxu1 %v314_v51  ;;  %2053 = vmatprep.subr.bf16.mxu0 %v307_v56  ;;  %v102_v51 = vld [vmem:[#allocation4 + $0xd0] sm:$0xff] }
  0x7f   :  { %2085 = vmatprep.subr.bf16.mxu1 %v315_v57  ;;  %v166_v60 = vmul.f32 0.088388346, %v102_v51 }
  0x81   :  { %v217_v9 = vpack.c.bf16 %v167_v61, %v166_v60  ;;  %v126_v60 = vld [vmem:[#allocation4 + $0x190] sm:$0xff]  ;;  %v127_v61 = vld [vmem:[#allocation4 + $0x198] sm:$0xff] }
  0x82   :  { %v190_v4 = vmul.f32 0.088388346, %v126_v60  ;;  %v191_v5 = vmul.f32 0.088388346, %v127_v61 }
  0x84   :  { %v229_v11 = vpack.c.bf16 %v191_v5, %v190_v4 }
  0x85   :  { %2054 = vmatpush3.bf16.xpose.msra.mxu0 %v307_v56  ;;  %v151_v56 = vmul.f32 0.088388346, %v87_v49  ;;  %v297_v49 = vld [vmem:[#allocation7 + $0x1e8] sm:$0xff] }
  0x86   :  { %2086 = vmatpush3.bf16.xpose.msra.mxu1 %v315_v57  ;;  %2103 = vmatprep.subr.bf16.mxu0 %v316_v2  ;;  %v216_v57 = vpack.c.bf16 %v165_v46, %v164_v45  ;;  %v280_v46 = vld [vmem:[#allocation7 + $0x160] sm:$0xff]  ;;  %v330_v51 = vpack.c.bf16 %v297_v49, %v296_v48  ;;  %v200_v48 = vmul.f32 0.088388346, %v136_v40  ;;  %v201_v49 = vmul.f32 0.088388346, %v137_v41 }
  0x87   :  { %2135 = vmatprep.subr.bf16.mxu1 %v324_v3  ;;  %v209_v6 = vpack.c.bf16 %v151_v56, %v150_v55  ;;  %v299_v55 = vld [vmem:[#allocation7 + $0x1f8] sm:$0xff] }
  0x8c   :  { %2056 = vmatmul.mubr.bf16.vlgmr.msra.gmra.mrb[0].mxu0 %v205_v16 }
  0x8d   :  { %2088 = vmatmul.mubr.bf16.vlgmr.msra.gmra.mrb[0].mxu1 %v213_v21  ;;  %2104 = vmatpush3.bf16.xpose.msra.mxu0 %v316_v2  ;;  %v152_v2 = vmul.f32 0.088388346, %v88_v58  ;;  %v109_v21 = vld [vmem:[#allocation4 + $0x108] sm:$0xff]  ;;  %v110_v58 = vld [vmem:[#allocation4 + $0x110] sm:$0xff] }
  0x8e   :  { %2136 = vmatpush3.bf16.xpose.msra.mxu1 %v324_v3  ;;  %2105 = vmatprep.subr.bf16.mxu0 %v317_v24  ;;  %v153_v3 = vmul.f32 0.088388346, %v89_v59  ;;  %v173_v29 = vmul.f32 0.088388346, %v109_v21  ;;  %v111_v59 = vld [vmem:[#allocation4 + $0x118] sm:$0xff]  ;;  %v133_v21 = vld [vmem:[#allocation4 + $0x1c8] sm:$0xff] }
  0x8f   :  { %2137 = vmatprep.subr.bf16.mxu1 %v325_v27  ;;  %2059 = vmatprep.mubr.bf16.mxu0 %v206_v28  ;;  %v172_v28 = vmul.f32 0.088388346, %v108_v20  ;;  %v132_v20 = vld [vmem:[#allocation4 + $0x1c0] sm:$0xff] }
  0x90   :  { %2091 = vmatprep.mubr.bf16.mxu1 %v214_v31  ;;  %v210_v16 = vpack.c.bf16 %v153_v3, %v152_v2  ;;  %v293_v31 = vld [vmem:[#allocation7 + $0x1c8] sm:$0xff]  ;;  %v174_v2 = vmul.f32 0.088388346, %v110_v58  ;;  %v175_v3 = vmul.f32 0.088388346, %v111_v59 }
  0x91   :  { %v328_v37 = vpack.c.bf16 %v293_v31, %v292_v30  ;;  %v220_v38 = vpack.c.bf16 %v173_v29, %v172_v28  ;;  %v196_v28 = vmul.f32 0.088388346, %v132_v20  ;;  %v197_v29 = vmul.f32 0.088388346, %v133_v21 }
  0x92   :  { %v221_v10 = vpack.c.bf16 %v175_v3, %v174_v2  ;;  %v223_v30 = vpack.c.bf16 %v179_v23, %v178_v22  ;;  %v2789_v2 = vld [vmem:[#allocation10] sm:$0xff] }
  0x94   :  { %2060 = vmatmul.mubr.bf16.gmra.mrb[4].mxu0 %v207_v42  ;;  %v294_v42 = vld [vmem:[#allocation7 + $0x1d0] sm:$0xff] }
  0x95   :  { %2106 = vmatpush3.bf16.xpose.msra.mxu0 %v317_v24  ;;  %2092 = vmatmul.mubr.bf16.gmra.mrb[4].mxu1 %v215_v47  ;;  %v124_v24 = vld [vmem:[#allocation4 + $0x180] sm:$0xff]  ;;  %v329_v45 = vpack.c.bf16 %v295_v43, %v294_v42  ;;  %v281_v47 = vld [vmem:[#allocation7 + $0x168] sm:$0xff] }
  0x96   :  { %2138 = vmatpush3.bf16.xpose.msra.mxu1 %v325_v27  ;;  %2107 = vmatprep.subr.bf16.mxu0 %v318_v50  ;;  %v277_v27 = vld [vmem:[#allocation7 + $0x148] sm:$0xff]  ;;  %v188_v33 = vmul.f32 0.088388346, %v124_v24 }
  0x97   :  { %2139 = vmatprep.subr.bf16.mxu1 %v326_v53  ;;  %2063 = vmatprep.mubr.bf16.mxu0 %v208_v54  ;;  %v320_v36 = vpack.c.bf16 %v277_v27, %v276_v26  ;;  %v298_v54 = vld [vmem:[#allocation7 + $0x1f0] sm:$0xff]  ;;  %v180_v26 = vmul.f32 0.088388346, %v116_v18 }
  0x98   :  { %2095 = vmatprep.mubr.bf16.mxu1 %v216_v57  ;;  %v228_v39 = vpack.c.bf16 %v189_v34, %v188_v33  ;;  %v331_v57 = vpack.c.bf16 %v299_v55, %v298_v54  ;;  %v118_v33 = vld [vmem:[#allocation4 + $0x150] sm:$0xff]  ;;  %v119_v34 = vld [vmem:[#allocation4 + $0x158] sm:$0xff]  ;;  %v234_v55 = vpack.c.bf16 %v201_v49, %v200_v48 }
  0x99   :  { %v182_v42 = vmul.f32 0.088388346, %v118_v33  ;;  %v183_v43 = vmul.f32 0.088388346, %v119_v34  ;;  %v123_v54 = vld [vmem:[#allocation4 + $0x178] sm:$0xff] }
  0x9a   :  { %v187_v59 = vmul.f32 0.088388346, %v123_v54 }
  0x9c   :  { %2064 = vmatmul.mubr.bf16.gmra.mrb[8].mxu0 %v209_v6  ;;  %v176_v6 = vmul.f32 0.088388346, %v112_v62 }
  0x9d   :  { %2108 = vmatpush3.bf16.xpose.msra.mxu0 %v318_v50  ;;  %2096 = vmatmul.mubr.bf16.gmra.mrb[8].mxu1 %v217_v9  ;;  %v322_v50 = vpack.c.bf16 %v281_v47, %v280_v46  ;;  %v193_v9 = vmul.f32 0.088388346, %v129_v1 }
  0x9e   :  { %2140 = vmatpush3.bf16.xpose.msra.mxu1 %v326_v53  ;;  %2109 = vmatprep.subr.bf16.mxu0 %v319_v12  ;;  %v283_v53 = vld [vmem:[#allocation7 + $0x178] sm:$0xff] }
  0x9f   :  { %2141 = vmatprep.subr.bf16.mxu1 %v327_v15  ;;  %2067 = vmatprep.mubr.bf16.mxu0 %v210_v16  ;;  %v323_v56 = vpack.c.bf16 %v283_v53, %v282_v52  ;;  %v230_v16 = vpack.c.bf16 %v193_v9, %v192_v8  ;;  %v122_v53 = vld [vmem:[#allocation4 + $0x170] sm:$0xff] }
  0xa0   :  { %2099 = vmatprep.mubr.bf16.mxu1 %v218_v19  ;;  %v117_v19 = vld [vmem:[#allocation4 + $0x148] sm:$0xff]  ;;  %v186_v58 = vmul.f32 0.088388346, %v122_v53  ;;  %v2858_v53 = vld [vmem:[#allocation10 + $0x50] sm:$0xff] }
  0xa1   :  { %v181_v27 = vmul.f32 0.088388346, %v117_v19  ;;  %v2812_v19 = vld [vmem:[#allocation10 + $0x8] sm:$0xff] }
  0xa2   :  { %v227_v62 = vpack.c.bf16 %v187_v59, %v186_v58 }
  0xa4   :  { %2068 = vmatmul.mubr.bf16.gmra.mrb[12].mxu0 %v211_v32  ;;  %v224_v32 = vpack.c.bf16 %v181_v27, %v180_v26 }
  0xa5   :  { %2110 = vmatpush3.bf16.xpose.msra.mxu0 %v319_v12  ;;  %2100 = vmatmul.mubr.bf16.gmra.mrb[12].mxu1 %v219_v35  ;;  %v222_v12 = vpack.c.bf16 %v177_v7, %v176_v6  ;;  %v134_v35 = vld [vmem:[#allocation4 + $0x1d0] sm:$0xff] }
  0xa6   :  { %2142 = vmatpush3.bf16.xpose.msra.mxu1 %v327_v15  ;;  %2111 = vmatprep.subr.bf16.mxu0 %v320_v36  ;;  %v130_v15 = vld [vmem:[#allocation4 + $0x1b0] sm:$0xff] }
  0xa7   :  { %2143 = vmatprep.subr.bf16.mxu1 %v328_v37  ;;  %2119 = vmatprep.mubr.bf16.mxu0 %v220_v38  ;;  %v194_v24 = vmul.f32 0.088388346, %v130_v15  ;;  %v120_v38 = vld [vmem:[#allocation4 + $0x160] sm:$0xff] }
  0xa8   :  { %2151 = vmatprep.mubr.bf16.mxu1 %v228_v39  ;;  %v121_v39 = vld [vmem:[#allocation4 + $0x168] sm:$0xff]  ;;  %v184_v46 = vmul.f32 0.088388346, %v120_v38 }
  0xa9   :  { %v231_v31 = vpack.c.bf16 %v195_v25, %v194_v24  ;;  %v185_v47 = vmul.f32 0.088388346, %v121_v39  ;;  %v2818_v25 = vld [vmem:[#allocation10 + $0x30] sm:$0xff] }
  0xab   :  { %v226_v52 = vpack.c.bf16 %v185_v47, %v184_v46 }
  0xad   :  { %2112 = vmatpush3.bf16.xpose.msra.mxu0 %v320_v36  ;;  %v232_v36 = vpack.c.bf16 %v197_v29, %v196_v28  ;;  %v2824_v28 = vld [vmem:[#allocation10 + $0x38] sm:$0xff] }
  0xae   :  { %2144 = vmatpush3.bf16.xpose.msra.mxu1 %v328_v37  ;;  %2113 = vmatprep.subr.bf16.mxu0 %v321_v44  ;;  %v135_v37 = vld [vmem:[#allocation4 + $0x1d8] sm:$0xff] }
  0xaf   :  { %2145 = vmatprep.subr.bf16.mxu1 %v329_v45 }
  0xb5   :  { %2114 = vmatpush3.bf16.xpose.msra.mxu0 %v321_v44  ;;  %v198_v44 = vmul.f32 0.088388346, %v134_v35 }
  0xb6   :  { %2146 = vmatpush3.bf16.xpose.msra.mxu1 %v329_v45  ;;  %2115 = vmatprep.subr.bf16.mxu0 %v322_v50  ;;  %v199_v45 = vmul.f32 0.088388346, %v135_v37 }
  0xb7   :  { %2147 = vmatprep.subr.bf16.mxu1 %v330_v51 }
  0xbd   :  { %2116 = vmatpush3.bf16.xpose.msra.mxu0 %v322_v50  ;;  %v225_v50 = vpack.c.bf16 %v183_v43, %v182_v42  ;;  %v2845_v42 = vld [vmem:[#allocation10 + $0x20] sm:$0xff]  ;;  %v2848_v43 = vld [vmem:[#allocation10 + $0x28] sm:$0xff] }
  0xbe   :  { %2148 = vmatpush3.bf16.xpose.msra.mxu1 %v330_v51  ;;  %2117 = vmatprep.subr.bf16.mxu0 %v323_v56  ;;  %v233_v51 = vpack.c.bf16 %v199_v45, %v198_v44 }
  0xbf   :  { %2149 = vmatprep.subr.bf16.mxu1 %v331_v57 }
  0xc5   :  { %2118 = vmatpush3.bf16.xpose.msra.mxu0 %v323_v56  ;;  %v138_v56 = vld [vmem:[#allocation4 + $0x1f0] sm:$0xff] }
  0xc6   :  { %2150 = vmatpush3.bf16.xpose.msra.mxu1 %v331_v57  ;;  %v139_v57 = vld [vmem:[#allocation4 + $0x1f8] sm:$0xff]  ;;  %v202_v60 = vmul.f32 0.088388346, %v138_v56 }
  0xc7   :  { %v203_v61 = vmul.f32 0.088388346, %v139_v57  ;;  %v2864_v56 = vld [vmem:[#allocation10 + $0x58] sm:$0xff] }
  0xc9   :  { %v235_v63 = vpack.c.bf16 %v203_v61, %v202_v60 }
  0xcc   :  { %2120 = vmatmul.mubr.bf16.vlgmr.msra.gmra.mrb[16].mxu0 %v221_v10 }
  0xcd   :  { %2152 = vmatmul.mubr.bf16.vlgmr.msra.gmra.mrb[16].mxu1 %v229_v11  ;;  %2123 = vmatprep.mubr.bf16.mxu0 %v222_v12  ;;  %v2798_v11 = vld [vmem:[#allocation10 + $0x18] sm:$0xff] }
  0xce   :  { %2155 = vmatprep.mubr.bf16.mxu1 %v230_v16 }
  0xd4   :  { %2124 = vmatmul.mubr.bf16.gmra.mrb[20].mxu0 %v223_v30 }
  0xd5   :  { %2156 = vmatmul.mubr.bf16.gmra.mrb[20].mxu1 %v231_v31  ;;  %2127 = vmatprep.mubr.bf16.mxu0 %v224_v32 }
  0xd6   :  { %2159 = vmatprep.mubr.bf16.mxu1 %v232_v36 }
  0xdc   :  { %2128 = vmatmul.mubr.bf16.gmra.mrb[24].mxu0 %v225_v50 }
  0xdd   :  { %2160 = vmatmul.mubr.bf16.gmra.mrb[24].mxu1 %v233_v51  ;;  %2131 = vmatprep.mubr.bf16.mxu0 %v226_v52 }
  0xde   :  { %2163 = vmatprep.mubr.bf16.mxu1 %v234_v55 }
  0xe4   :  { %2132 = vmatmul.mubr.bf16.gmra.mrb[28].mxu0 %v227_v62  ;;  %v2885_v62 = vld [vmem:[#allocation10 + $0x40] sm:$0xff] }
  0xe5   :  { %2164 = vmatmul.mubr.bf16.gmra.mrb[28].mxu1 %v235_v63  ;;  %v2888_v63 = vld [vmem:[#allocation10 + $0x48] sm:$0xff] }
 0x15f   :  { %v2057_v1 = vpop.f32.mrb[0].mxu0 }
 0x160   :  { %v2792_v3 = vadd.f32 %v2057_v1, %v2787_v0  ;;  %v2089_v4 = vpop.f32.mrb[0].mxu1  ;;  %v382_v5 = vpop.f32.mrb[1].mxu0 }
 0x161   :  { %v479_v6 = vpop.f32.mrb[1].mxu1  ;;  %v2058_v7 = vpop.f32.mrb[2].mxu0  ;;  %v2801_v13 = vadd.f32 %v2089_v4, %v2787_v0  ;;  %v2809_v16 = vadd.f32 %v382_v5, %v2789_v2  ;;  %v2898_v5 = vld [vmem:[#allocation10 + $0x70] sm:$0xff] }
 0x162   :  { %v2795_v8 = vadd.f32 %v479_v6, %v2789_v2  ;;  %v2090_v9 = vpop.f32.mrb[2].mxu1  ;;  %740 = vmax.xlane.f32.xlu0 %v2792_v3  ;;  %v385_v10 = vpop.f32.mrb[3].mxu0  ;;  %v2805_v14 = vadd.f32 %v2058_v7, %v2798_v11  ;;  %v2904_v7 = vld [vmem:[#allocation10 + $0x78] sm:$0xff] }
 0x163   :  { %v482_v12 = vpop.f32.mrb[3].mxu1  ;;  %v2815_v22 = vadd.f32 %v2090_v9, %v2798_v11  ;;  %v2821_v27 = vadd.f32 %v385_v10, %v2812_v19 }
 0x164   :  { %768 = vmax.xlane.f32.xlu1 %v2795_v8  ;;  %v2827_v29 = vadd.f32 %v482_v12, %v2812_v19 }
 0x166   :  { %772 = vmax.xlane.f32.xlu0 %v2801_v13 }
 0x167   :  { %v2061_v15 = vpop.f32.mrb[4].mxu0 }
 0x168   :  { %742 = vmax.xlane.f32.xlu1 %v2805_v14  ;;  %v398_v17 = vpop.f32.mrb[5].mxu0  ;;  %v2093_v18 = vpop.f32.mrb[4].mxu1  ;;  %v2830_v30 = vadd.f32 %v2061_v15, %v2818_v25 }
 0x169   :  { %v2062_v20 = vpop.f32.mrb[6].mxu0  ;;  %v495_v21 = vpop.f32.mrb[5].mxu1  ;;  %v2838_v37 = vadd.f32 %v2093_v18, %v2818_v25  ;;  %v2851_v45 = vadd.f32 %v398_v17, %v2845_v42  ;;  %v2925_v18 = vld [vmem:[#allocation10 + $0x60] sm:$0xff] }
 0x16a   :  { %736 = vmax.xlane.f32.xlu0 %v2809_v16  ;;  %v401_v23 = vpop.f32.mrb[7].mxu0  ;;  %v2094_v24 = vpop.f32.mrb[6].mxu1  ;;  %v2834_v32 = vadd.f32 %v2062_v20, %v2824_v28  ;;  %v2861_v55 = vadd.f32 %v495_v21, %v2845_v42  ;;  %v2928_v20 = vld [vmem:[#allocation10 + $0x68] sm:$0xff] }
 0x16b   :  { %v498_v26 = vpop.f32.mrb[7].mxu1  ;;  %v2842_v41 = vadd.f32 %v2094_v24, %v2824_v28  ;;  %v2855_v50 = vadd.f32 %v401_v23, %v2848_v43 }
 0x16c   :  { %774 = vmax.xlane.f32.xlu1 %v2815_v22  ;;  %v2867_v57 = vadd.f32 %v498_v26, %v2848_v43 }
 0x16e   :  { %738 = vmax.xlane.f32.xlu0 %v2821_v27 }
 0x16f   :  { %v2065_v31 = vpop.f32.mrb[8].mxu0 }
 0x170   :  { %770 = vmax.xlane.f32.xlu1 %v2827_v29  ;;  %v414_v33 = vpop.f32.mrb[9].mxu0  ;;  %v2097_v34 = vpop.f32.mrb[8].mxu1  ;;  %v2870_v58 = vadd.f32 %v2065_v31, %v2858_v53 }
 0x171   :  { %v2066_v35 = vpop.f32.mrb[10].mxu0  ;;  %v511_v36 = vpop.f32.mrb[9].mxu1  ;;  %v2878_v60 = vadd.f32 %v2097_v34, %v2858_v53  ;;  %v2891_v1 = vadd.f32 %v414_v33, %v2885_v62 }
 0x172   :  { %748 = vmax.xlane.f32.xlu0 %v2830_v30  ;;  %v417_v38 = vpop.f32.mrb[11].mxu0  ;;  %v2098_v39 = vpop.f32.mrb[10].mxu1  ;;  %v2874_v59 = vadd.f32 %v2066_v35, %v2864_v56  ;;  %v2901_v6 = vadd.f32 %v511_v36, %v2885_v62 }
 0x173   :  { %v514_v40 = vpop.f32.mrb[11].mxu1  ;;  %v2882_v61 = vadd.f32 %v2098_v39, %v2864_v56  ;;  %v2895_v4 = vadd.f32 %v417_v38, %v2888_v63 }
 0x174   :  { %750 = vmax.xlane.f32.xlu1 %v2834_v32  ;;  %v2907_v9 = vadd.f32 %v514_v40, %v2888_v63 }
 0x176   :  { %780 = vmax.xlane.f32.xlu0 %v2838_v37 }
 0x177   :  { %v2069_v44 = vpop.f32.mrb[12].mxu0 }
 0x178   :  { %782 = vmax.xlane.f32.xlu1 %v2842_v41  ;;  %v430_v46 = vpop.f32.mrb[13].mxu0  ;;  %v2101_v47 = vpop.f32.mrb[12].mxu1  ;;  %v2910_v10 = vadd.f32 %v2069_v44, %v2898_v5 }
 0x179   :  { %v2070_v48 = vpop.f32.mrb[14].mxu0  ;;  %v527_v49 = vpop.f32.mrb[13].mxu1  ;;  %v2918_v15 = vadd.f32 %v2101_v47, %v2898_v5  ;;  %v2931_v21 = vadd.f32 %v430_v46, %v2925_v18 }
 0x17a   :  { %744 = vmax.xlane.f32.xlu0 %v2851_v45  ;;  %v433_v51 = vpop.f32.mrb[15].mxu0  ;;  %v2102_v52 = vpop.f32.mrb[14].mxu1  ;;  %v2914_v12 = vadd.f32 %v2070_v48, %v2904_v7  ;;  %v2939_v24 = vadd.f32 %v527_v49, %v2925_v18 }
 0x17b   :  { %v530_v54 = vpop.f32.mrb[15].mxu1  ;;  %v2922_v17 = vadd.f32 %v2102_v52, %v2904_v7  ;;  %v2935_v23 = vadd.f32 %v433_v51, %v2928_v20 }
 0x17c   :  { %746 = vmax.xlane.f32.xlu1 %v2855_v50  ;;  %3470 = vst [vmem:[#allocation17_spill] sm:$0xff] %v2939_v24  ;;  %v2943_v26 = vadd.f32 %v530_v54, %v2928_v20 }
 0x17e   :  { %776 = vmax.xlane.f32.xlu0 %v2861_v55  ;;  %3471 = vst [vmem:[#allocation18_spill] sm:$0xff] %v2943_v26 }
 0x180   :  { %778 = vmax.xlane.f32.xlu1 %v2867_v57 }
 0x182   :  { %756 = vmax.xlane.f32.xlu0 %v2870_v58 }
 0x184   :  { %758 = vmax.xlane.f32.xlu1 %v2874_v59 }
 0x186   :  { %788 = vmax.xlane.f32.xlu0 %v2878_v60 }
 0x188   :  { %790 = vmax.xlane.f32.xlu1 %v2882_v61 }
 0x18a   :  { %752 = vmax.xlane.f32.xlu0 %v2891_v1 }
 0x18c   :  { %754 = vmax.xlane.f32.xlu1 %v2895_v4 }
 0x18e   :  { %784 = vmax.xlane.f32.xlu0 %v2901_v6 }
 0x190   :  { %786 = vmax.xlane.f32.xlu1 %v2907_v9 }
 0x192   :  { %764 = vmax.xlane.f32.xlu0 %v2910_v10 }
 0x194   :  { %766 = vmax.xlane.f32.xlu1 %v2914_v12 }
 0x196   :  { %796 = vmax.xlane.f32.xlu0 %v2918_v15 }
 0x198   :  { %798 = vmax.xlane.f32.xlu1 %v2922_v17 }
 0x19a   :  { %760 = vmax.xlane.f32.xlu0 %v2931_v21 }
 0x19c   :  { %762 = vmax.xlane.f32.xlu1 %v2935_v23 }
 0x19e   :  { %792 = vmax.xlane.f32.xlu0 %v2939_v24 }
 0x19f   :  { %v2121_v31 = vpop.f32.mrb[16].mxu0 }
 0x1a0   :  { %v2947_v33 = vadd.f32 %v2121_v31, %v2787_v0  ;;  %794 = vmax.xlane.f32.xlu1 %v2943_v26  ;;  %v576_v34 = vpop.f32.mrb[17].mxu0  ;;  %v2153_v35 = vpop.f32.mrb[16].mxu1 }
 0x1a1   :  { %v2122_v36 = vpop.f32.mrb[18].mxu0  ;;  %v673_v38 = vpop.f32.mrb[17].mxu1  ;;  %v2951_v39 = vadd.f32 %v2153_v35, %v2787_v0  ;;  %v2963_v51 = vadd.f32 %v576_v34, %v2789_v2 }
 0x1a2   :  { %3472 = vst [vmem:[#allocation19_spill] sm:$0xff] %v2947_v33  ;;  %v2954_v40 = vadd.f32 %v2122_v36, %v2798_v11  ;;  %v579_v44 = vpop.f32.mrb[19].mxu0  ;;  %v2154_v46 = vpop.f32.mrb[18].mxu1  ;;  %804 = vmax.xlane.f32.xlu0 %v2947_v33 }
 0x1a3   :  { %3473 = vst [vmem:[#allocation20_spill] sm:$0xff] %v2951_v39  ;;  %v2958_v47 = vadd.f32 %v2154_v46, %v2798_v11  ;;  %v676_v48 = vpop.f32.mrb[19].mxu1  ;;  %3476 = vst [vmem:[#allocation23_spill] sm:$0xff] %v2963_v51  ;;  %v2967_v35 = vadd.f32 %v579_v44, %v2812_v19 }
 0x1a4   :  { %3474 = vst [vmem:[#allocation21_spill] sm:$0xff] %v2954_v40  ;;  %806 = vmax.xlane.f32.xlu1 %v2954_v40  ;;  %v2975_v34 = vadd.f32 %v676_v48, %v2812_v19 }
 0x1a5   :  { %3475 = vst [vmem:[#allocation22_spill] sm:$0xff] %v2958_v47  ;;  %3477 = vst [vmem:[#allocation24_spill] sm:$0xff] %v2967_v35 }
 0x1a6   :  { %836 = vmax.xlane.f32.xlu0 %v2951_v39  ;;  %v2971_v39 = vadd.f32 %v673_v38, %v2789_v2  ;;  %3479 = vst [vmem:[#allocation26_spill] sm:$0xff] %v2975_v34 }
 0x1a7   :  { %v2125_v49 = vpop.f32.mrb[20].mxu0 }
 0x1a8   :  { %838 = vmax.xlane.f32.xlu1 %v2958_v47  ;;  %v592_v0 = vpop.f32.mrb[21].mxu0  ;;  %v2157_v52 = vpop.f32.mrb[20].mxu1  ;;  %3478 = vst [vmem:[#allocation25_spill] sm:$0xff] %v2971_v39  ;;  %v2978_v47 = vadd.f32 %v2125_v49, %v2818_v25 }
 0x1a9   :  { %v2126_v54 = vpop.f32.mrb[22].mxu0  ;;  %v689_v31 = vpop.f32.mrb[21].mxu1  ;;  %v2986_v38 = vadd.f32 %v2157_v52, %v2818_v25 }
 0x1aa   :  { %800 = vmax.xlane.f32.xlu0 %v2963_v51  ;;  %v595_v11 = vpop.f32.mrb[23].mxu0  ;;  %v2158_v36 = vpop.f32.mrb[22].mxu1  ;;  %3480 = vst [vmem:[#allocation27_spill] sm:$0xff] %v2978_v47  ;;  %v2983_v2 = vadd.f32 %v2126_v54, %v2824_v28 }
 0x1ab   :  { %v692_v46 = vpop.f32.mrb[23].mxu1  ;;  %3482 = vst [vmem:[#allocation29_spill] sm:$0xff] %v2986_v38  ;;  %v2999_v24 = vadd.f32 %v595_v11, %v2848_v43 }
 0x1ac   :  { %802 = vmax.xlane.f32.xlu1 %v2967_v35  ;;  %3481 = vst [vmem:[#allocation28_spill] sm:$0xff] %v2983_v2  ;;  %v2995_v35 = vadd.f32 %v592_v0, %v2845_v42  ;;  %v3007_v0 = vadd.f32 %v692_v46, %v2848_v43 }
 0x1ae   :  { %832 = vmax.xlane.f32.xlu0 %v2971_v39  ;;  %v2991_v39 = vadd.f32 %v2158_v36, %v2824_v28  ;;  %3484 = vst [vmem:[#allocation31_spill] sm:$0xff] %v2995_v35 }
 0x1af   :  { %v2129_v44 = vpop.f32.mrb[24].mxu0 }
 0x1b0   :  { %834 = vmax.xlane.f32.xlu1 %v2975_v34  ;;  %v608_v51 = vpop.f32.mrb[25].mxu0  ;;  %v2161_v40 = vpop.f32.mrb[24].mxu1  ;;  %3483 = vst [vmem:[#allocation30_spill] sm:$0xff] %v2991_v39 }
 0x1b1   :  { %v2130_v33 = vpop.f32.mrb[26].mxu0  ;;  %v705_v26 = vpop.f32.mrb[25].mxu1  ;;  %v3027_v43 = vadd.f32 %v608_v51, %v2885_v62 }
 0x1b2   :  { %812 = vmax.xlane.f32.xlu0 %v2978_v47  ;;  %v611_v19 = vpop.f32.mrb[27].mxu0  ;;  %v2162_v48 = vpop.f32.mrb[26].mxu1  ;;  %v3015_v11 = vadd.f32 %v2130_v33, %v2864_v56 }
 0x1b3   :  { %v708_v49 = vpop.f32.mrb[27].mxu1  ;;  %v3031_v33 = vadd.f32 %v611_v19, %v2888_v63 }
 0x1b4   :  { %814 = vmax.xlane.f32.xlu1 %v2983_v2 }
 0x1b6   :  { %844 = vmax.xlane.f32.xlu0 %v2986_v38  ;;  %v3003_v38 = vadd.f32 %v689_v31, %v2845_v42  ;;  %v3023_v42 = vadd.f32 %v2162_v48, %v2864_v56  ;;  %v3039_v56 = vadd.f32 %v708_v49, %v2888_v63 }
 0x1b7   :  { %v2133_v34 = vpop.f32.mrb[28].mxu0 }
 0x1b8   :  { %846 = vmax.xlane.f32.xlu1 %v2991_v39  ;;  %v624_v25 = vpop.f32.mrb[29].mxu0  ;;  %v2165_v52 = vpop.f32.mrb[28].mxu1  ;;  %v3010_v39 = vadd.f32 %v2129_v44, %v2858_v53 }
 0x1b9   :  { %v2134_v54 = vpop.f32.mrb[30].mxu0  ;;  %v721_v47 = vpop.f32.mrb[29].mxu1  ;;  %v3050_v31 = vadd.f32 %v2165_v52, %v2898_v5  ;;  %v3059_v63 = vadd.f32 %v624_v25, %v2925_v18 }
 0x1ba   :  { %808 = vmax.xlane.f32.xlu0 %v2995_v35  ;;  %v627_v2 = vpop.f32.mrb[31].mxu0  ;;  %v2166_v28 = vpop.f32.mrb[30].mxu1  ;;  %v3018_v35 = vadd.f32 %v2161_v40, %v2858_v53  ;;  %v3035_v53 = vadd.f32 %v705_v26, %v2885_v62  ;;  %v3042_v40 = vadd.f32 %v2133_v34, %v2898_v5  ;;  %v3047_v51 = vadd.f32 %v2134_v54, %v2904_v7 }
 0x1bb   :  { %v724_v36 = vpop.f32.mrb[31].mxu1  ;;  %v3055_v62 = vadd.f32 %v2166_v28, %v2904_v7  ;;  %v3063_v26 = vadd.f32 %v627_v2, %v2928_v20  ;;  %v3067_v5 = vadd.f32 %v721_v47, %v2925_v18 }
 0x1bc   :  { %810 = vmax.xlane.f32.xlu1 %v2999_v24  ;;  %v3071_v7 = vadd.f32 %v724_v36, %v2928_v20 }
 0x1be   :  { %840 = vmax.xlane.f32.xlu0 %v3003_v38 }
 0x1c0   :  { %842 = vmax.xlane.f32.xlu1 %v3007_v0 }
 0x1c2   :  { %820 = vmax.xlane.f32.xlu0 %v3010_v39 }
 0x1c4   :  { %822 = vmax.xlane.f32.xlu1 %v3015_v11 }
 0x1c6   :  { %852 = vmax.xlane.f32.xlu0 %v3018_v35 }
 0x1c8   :  { %854 = vmax.xlane.f32.xlu1 %v3023_v42 }
 0x1ca   :  { %816 = vmax.xlane.f32.xlu0 %v3027_v43 }
 0x1cc   :  { %818 = vmax.xlane.f32.xlu1 %v3031_v33 }
 0x1ce   :  { %848 = vmax.xlane.f32.xlu0 %v3035_v53 }
 0x1d0   :  { %850 = vmax.xlane.f32.xlu1 %v3039_v56 }
 0x1d2   :  { %828 = vmax.xlane.f32.xlu0 %v3042_v40 }
 0x1d4   :  { %830 = vmax.xlane.f32.xlu1 %v3047_v51 }
 0x1d6   :  { %860 = vmax.xlane.f32.xlu0 %v3050_v31 }
 0x1d8   :  { %862 = vmax.xlane.f32.xlu1 %v3055_v62 }
 0x1da   :  { %824 = vmax.xlane.f32.xlu0 %v3059_v63 }
 0x1dc   :  { %826 = vmax.xlane.f32.xlu1 %v3063_v26 }
 0x1de   :  { %856 = vmax.xlane.f32.xlu0 %v3067_v5 }
 0x1e0   :  { %858 = vmax.xlane.f32.xlu1 %v3071_v7 }
 0x1ef   :  { %v741_v46 = vpop.xlane.xlu0 %740 }
 0x1f0   :  { %v866_v34 = vsub.f32 %v2792_v3, %v741_v46 }
 0x1f1   :  { %v769_v44 = vpop.xlane.xlu1 %768 }
 0x1f2   :  { %v932_v2 = vmul.f32 1.442695, %v866_v34  ;;  %v880_v20 = vsub.f32 %v2795_v8, %v769_v44 }
 0x1f3   :  { %v773_v19 = vpop.xlane.xlu0 %772 }
 0x1f4   :  { %2302 = vpow2.f32 %v932_v2  ;;  %v882_v48 = vsub.f32 %v2801_v13, %v773_v19  ;;  %v960_v46 = vmul.f32 1.442695, %v880_v20 }
 0x1f5   :  { %v743_v18 = vpop.xlane.xlu1 %742 }
 0x1f6   :  { %v964_v47 = vmul.f32 1.442695, %v882_v48  ;;  %v867_v49 = vsub.f32 %v2805_v14, %v743_v18  ;;  %v1344_v18 = vld [vmem:[#allocation9] sm:$0xff] }
 0x1f7   :  { %v737_v25 = vpop.xlane.xlu0 %736 }
 0x1f8   :  { %2304 = vpow2.f32 %v964_v47  ;;  %v934_v52 = vmul.f32 1.442695, %v867_v49  ;;  %v864_v54 = vsub.f32 %v2809_v16, %v737_v25  ;;  %v1345_v47 = vld [vmem:[#allocation9 + $0x8] sm:$0xff] }
 0x1f9   :  { %v775_v28 = vpop.xlane.xlu1 %774 }
 0x1fa   :  { %2306 = vpow2.f32 %v934_v52  ;;  %v928_v3 = vmul.f32 1.442695, %v864_v54  ;;  %v883_v36 = vsub.f32 %v2815_v22, %v775_v28  ;;  %v1408_v52 = vpack.c.bf16 %v1345_v47, %v1344_v18  ;;  %v1346_v18 = vld [vmem:[#allocation9 + $0x10] sm:$0xff]  ;;  %v1360_v47 = vld [vmem:[#allocation9 + $0x80] sm:$0xff] }
 0x1fb   :  { %v739_v34 = vpop.xlane.xlu0 %738 }
 0x1fc   :  { %2308 = vpow2.f32 %v928_v3  ;;  %v966_v13 = vmul.f32 1.442695, %v883_v36  ;;  %v865_v2 = vsub.f32 %v2821_v27, %v739_v34  ;;  %2167 = vmatprep.subr.bf16.mxu0 %v1408_v52 }
 0x1fd   :  { %v771_v19 = vpop.xlane.xlu1 %770  ;;  %2168 = vmatpush3.bf16.msra.mxu0 %v1408_v52 }
 0x1fe   :  { %v3082_v14 = vpop.eup %2302  ;;  %2310 = vpow2.f32 %v966_v13  ;;  %v930_v8 = vmul.f32 1.442695, %v865_v2  ;;  %v881_v44 = vsub.f32 %v2827_v29, %v771_v19 }
 0x1ff   :  { %2312 = vpow2.f32 %v960_v46  ;;  %1060 = vadd.xlane.f32.xlu0 %v3082_v14  ;;  %v749_v16 = vpop.xlane.xlu0 %748 }
 0x200   :  { %2314 = vpow2.f32 %v930_v8  ;;  %v870_v22 = vsub.f32 %v2830_v30, %v749_v16  ;;  %v962_v27 = vmul.f32 1.442695, %v881_v44 }
 0x201   :  { %v751_v48 = vpop.xlane.xlu1 %750 }
 0x202   :  { %v3087_v49 = vpop.eup %2304  ;;  %v940_v20 = vmul.f32 1.442695, %v870_v22  ;;  %v871_v25 = vsub.f32 %v2834_v32, %v751_v48 }
 0x203   :  { %1092 = vadd.xlane.f32.xlu0 %v3087_v49  ;;  %v781_v29 = vpop.xlane.xlu0 %780 }
 0x204   :  { %v3091_v54 = vpop.eup %2306  ;;  %2316 = vpow2.f32 %v940_v20  ;;  %v886_v28 = vsub.f32 %v2838_v37, %v781_v29  ;;  %v942_v36 = vmul.f32 1.442695, %v871_v25  ;;  %v1361_v25 = vld [vmem:[#allocation9 + $0x88] sm:$0xff] }
 0x205   :  { %v783_v30 = vpop.xlane.xlu1 %782  ;;  %1062 = vadd.xlane.f32.xlu1 %v3091_v54  ;;  %2318 = vpow2.f32 %v962_v27 }
 0x206   :  { %v3095_v3 = vpop.eup %2308  ;;  %v972_v46 = vmul.f32 1.442695, %v886_v28  ;;  %v887_v32 = vsub.f32 %v2842_v41, %v783_v30  ;;  %v1416_v30 = vpack.c.bf16 %v1361_v25, %v1360_v47  ;;  %v1364_v25 = vld [vmem:[#allocation9 + $0xa0] sm:$0xff] }
 0x207   :  { %1056 = vadd.xlane.f32.xlu0 %v3095_v3  ;;  %v745_v34 = vpop.xlane.xlu0 %744 }
 0x208   :  { %v3099_v13 = vpop.eup %2310  ;;  %2320 = vpow2.f32 %v972_v46  ;;  %v868_v37 = vsub.f32 %v2851_v45, %v745_v34  ;;  %v974_v19 = vmul.f32 1.442695, %v887_v32  ;;  %v1347_v45 = vld [vmem:[#allocation9 + $0x18] sm:$0xff]  ;;  %2199 = vmatprep.subr.bf16.mxu1 %v1416_v30  ;;  %v1348_v32 = vld [vmem:[#allocation9 + $0x20] sm:$0xff]  ;;  %v1349_v34 = vld [vmem:[#allocation9 + $0x28] sm:$0xff] }
 0x209   :  { %v3102_v2 = vpop.eup %2312  ;;  %1094 = vadd.xlane.f32.xlu1 %v3099_v13  ;;  %v747_v8 = vpop.xlane.xlu1 %746  ;;  %2322 = vpow2.f32 %v942_v36  ;;  %v1409_v20 = vpack.c.bf16 %v1347_v45, %v1346_v18  ;;  %2200 = vmatpush3.bf16.msra.mxu1 %v1416_v30 }
 0x20a   :  { %v3105_v44 = vpop.eup %2314  ;;  %v936_v16 = vmul.f32 1.442695, %v868_v37  ;;  %v869_v41 = vsub.f32 %v2855_v50, %v747_v8  ;;  %v1362_v37 = vld [vmem:[#allocation9 + $0x90] sm:$0xff] }
 0x20b   :  { %1088 = vadd.xlane.f32.xlu0 %v3102_v2  ;;  %v777_v22 = vpop.xlane.xlu0 %776  ;;  %2169 = vmatprep.subr.bf16.mxu0 %v1409_v20 }
 0x20c   :  { %2324 = vpow2.f32 %v936_v16  ;;  %v884_v48 = vsub.f32 %v2861_v55, %v777_v22  ;;  %v938_v29 = vmul.f32 1.442695, %v869_v41  ;;  %2170 = vmatpush3.bf16.msra.mxu0 %v1409_v20  ;;  %v1363_v16 = vld [vmem:[#allocation9 + $0x98] sm:$0xff] }
 0x20d   :  { %2326 = vpow2.f32 %v974_v19  ;;  %v779_v27 = vpop.xlane.xlu1 %778  ;;  %1058 = vadd.xlane.f32.xlu1 %v3105_v44  ;;  %v1417_v18 = vpack.c.bf16 %v1363_v16, %v1362_v37  ;;  %v1351_v20 = vld [vmem:[#allocation9 + $0x38] sm:$0xff] }
 0x20e   :  { %v3111_v52 = vpop.eup %2316  ;;  %v968_v28 = vmul.f32 1.442695, %v884_v48  ;;  %v885_v50 = vsub.f32 %v2867_v57, %v779_v27  ;;  %v1410_v57 = vpack.c.bf16 %v1349_v34, %v1348_v32  ;;  %v1350_v27 = vld [vmem:[#allocation9 + $0x30] sm:$0xff] }
 0x20f   :  { %1068 = vadd.xlane.f32.xlu0 %v3111_v52  ;;  %v757_v36 = vpop.xlane.xlu0 %756  ;;  %v3115_v55 = vpop.eup %2318  ;;  %2201 = vmatprep.subr.bf16.mxu1 %v1417_v18 }
 0x210   :  { %2328 = vpow2.f32 %v968_v28  ;;  %v874_v46 = vsub.f32 %v2870_v58, %v757_v36  ;;  %v970_v19 = vmul.f32 1.442695, %v885_v50  ;;  %2171 = vmatprep.subr.bf16.mxu0 %v1410_v57  ;;  %2202 = vmatpush3.bf16.msra.mxu1 %v1417_v18  ;;  %v1365_v28 = vld [vmem:[#allocation9 + $0xa8] sm:$0xff] }
 0x211   :  { %v759_v8 = vpop.xlane.xlu1 %758  ;;  %1090 = vadd.xlane.f32.xlu1 %v3115_v55  ;;  %2330 = vpow2.f32 %v938_v29  ;;  %2172 = vmatpush3.bf16.msra.mxu0 %v1410_v57  ;;  %v1418_v32 = vpack.c.bf16 %v1365_v28, %v1364_v25  ;;  %v1366_v57 = vld [vmem:[#allocation9 + $0xb0] sm:$0xff]  ;;  %v1368_v28 = vld [vmem:[#allocation9 + $0xc0] sm:$0xff] }
 0x212   :  { %v3119_v41 = vpop.eup %2320  ;;  %v948_v22 = vmul.f32 1.442695, %v874_v46  ;;  %v875_v48 = vsub.f32 %v2874_v59, %v759_v8  ;;  %v1411_v59 = vpack.c.bf16 %v1351_v20, %v1350_v27  ;;  %v1353_v8 = vld [vmem:[#allocation9 + $0x48] sm:$0xff] }
 0x213   :  { %1100 = vadd.xlane.f32.xlu0 %v3119_v41  ;;  %v789_v58 = vpop.xlane.xlu0 %788  ;;  %v3123_v45 = vpop.eup %2322  ;;  %2203 = vmatprep.subr.bf16.mxu1 %v1418_v32 }
 0x214   :  { %2332 = vpow2.f32 %v948_v22  ;;  %v890_v47 = vsub.f32 %v2878_v60, %v789_v58  ;;  %v950_v30 = vmul.f32 1.442695, %v875_v48  ;;  %2173 = vmatprep.subr.bf16.mxu0 %v1411_v59  ;;  %2204 = vmatpush3.bf16.msra.mxu1 %v1418_v32  ;;  %v1367_v48 = vld [vmem:[#allocation9 + $0xb8] sm:$0xff] }
 0x215   :  { %2334 = vpow2.f32 %v970_v19  ;;  %v791_v29 = vpop.xlane.xlu1 %790  ;;  %1070 = vadd.xlane.f32.xlu1 %v3123_v45  ;;  %2174 = vmatpush3.bf16.msra.mxu0 %v1411_v59  ;;  %v1352_v19 = vld [vmem:[#allocation9 + $0x40] sm:$0xff]  ;;  %v1419_v27 = vpack.c.bf16 %v1367_v48, %v1366_v57  ;;  %v1355_v59 = vld [vmem:[#allocation9 + $0x58] sm:$0xff] }
 0x216   :  { %v3127_v50 = vpop.eup %2324  ;;  %v980_v36 = vmul.f32 1.442695, %v890_v47  ;;  %v891_v46 = vsub.f32 %v2882_v61, %v791_v29  ;;  %v1412_v61 = vpack.c.bf16 %v1353_v8, %v1352_v19  ;;  %v1354_v29 = vld [vmem:[#allocation9 + $0x50] sm:$0xff] }
 0x217   :  { %v3130_v60 = vpop.eup %2326  ;;  %1064 = vadd.xlane.f32.xlu0 %v3127_v50  ;;  %v753_v34 = vpop.xlane.xlu0 %752  ;;  %2205 = vmatprep.subr.bf16.mxu1 %v1419_v27 }
 0x218   :  { %2336 = vpow2.f32 %v980_v36  ;;  %v872_v37 = vsub.f32 %v2891_v1, %v753_v34  ;;  %v982_v16 = vmul.f32 1.442695, %v891_v46  ;;  %2175 = vmatprep.subr.bf16.mxu0 %v1412_v61  ;;  %2206 = vmatpush3.bf16.msra.mxu1 %v1419_v27  ;;  %v1369_v36 = vld [vmem:[#allocation9 + $0xc8] sm:$0xff] }
 0x219   :  { %v755_v22 = vpop.xlane.xlu1 %754  ;;  %1102 = vadd.xlane.f32.xlu1 %v3130_v60  ;;  %2338 = vpow2.f32 %v950_v30  ;;  %2176 = vmatpush3.bf16.msra.mxu0 %v1412_v61  ;;  %v1420_v19 = vpack.c.bf16 %v1369_v36, %v1368_v28  ;;  %v1370_v61 = vld [vmem:[#allocation9 + $0xd0] sm:$0xff]  ;;  %v1372_v36 = vld [vmem:[#allocation9 + $0xe0] sm:$0xff] }
 0x21a   :  { %v3135_v18 = vpop.eup %2328  ;;  %v944_v58 = vmul.f32 1.442695, %v872_v37  ;;  %v873_v47 = vsub.f32 %v2895_v4, %v755_v22  ;;  %v1413_v4 = vpack.c.bf16 %v1355_v59, %v1354_v29  ;;  %v1357_v22 = vld [vmem:[#allocation9 + $0x68] sm:$0xff] }
 0x21b   :  { %1096 = vadd.xlane.f32.xlu0 %v3135_v18  ;;  %v785_v1 = vpop.xlane.xlu0 %784  ;;  %v3139_v20 = vpop.eup %2330  ;;  %2207 = vmatprep.subr.bf16.mxu1 %v1420_v19 }
 0x21c   :  { %2340 = vpow2.f32 %v944_v58  ;;  %v888_v25 = vsub.f32 %v2901_v6, %v785_v1  ;;  %v946_v32 = vmul.f32 1.442695, %v873_v47  ;;  %2177 = vmatprep.subr.bf16.mxu0 %v1413_v4  ;;  %2208 = vmatpush3.bf16.msra.mxu1 %v1420_v19  ;;  %v1371_v47 = vld [vmem:[#allocation9 + $0xd8] sm:$0xff] }
 0x21d   :  { %2342 = vpow2.f32 %v982_v16  ;;  %v787_v30 = vpop.xlane.xlu1 %786  ;;  %1066 = vadd.xlane.f32.xlu1 %v3139_v20  ;;  %2178 = vmatpush3.bf16.msra.mxu0 %v1413_v4  ;;  %v1356_v16 = vld [vmem:[#allocation9 + $0x60] sm:$0xff]  ;;  %v1421_v29 = vpack.c.bf16 %v1371_v47, %v1370_v61  ;;  %v1359_v4 = vld [vmem:[#allocation9 + $0x78] sm:$0xff] }
 0x21e   :  { %v3143_v46 = vpop.eup %2332  ;;  %v976_v34 = vmul.f32 1.442695, %v888_v25  ;;  %v889_v37 = vsub.f32 %v2907_v9, %v787_v30  ;;  %v1414_v9 = vpack.c.bf16 %v1357_v22, %v1356_v16  ;;  %v1358_v30 = vld [vmem:[#allocation9 + $0x70] sm:$0xff] }
 0x21f   :  { %v3146_v6 = vpop.eup %2334  ;;  %1076 = vadd.xlane.f32.xlu0 %v3143_v46  ;;  %v765_v8 = vpop.xlane.xlu0 %764  ;;  %2209 = vmatprep.subr.bf16.mxu1 %v1421_v29 }
 0x220   :  { %2344 = vpow2.f32 %v976_v34  ;;  %v878_v57 = vsub.f32 %v2910_v10, %v765_v8  ;;  %v978_v48 = vmul.f32 1.442695, %v889_v37  ;;  %2179 = vmatprep.subr.bf16.mxu0 %v1414_v9  ;;  %2210 = vmatpush3.bf16.msra.mxu1 %v1421_v29  ;;  %v1373_v34 = vld [vmem:[#allocation9 + $0xe8] sm:$0xff] }
 0x221   :  { %v767_v58 = vpop.xlane.xlu1 %766  ;;  %1098 = vadd.xlane.f32.xlu1 %v3146_v6  ;;  %2346 = vpow2.f32 %v946_v32  ;;  %2180 = vmatpush3.bf16.msra.mxu0 %v1414_v9  ;;  %v1422_v16 = vpack.c.bf16 %v1373_v34, %v1372_v36  ;;  %v3487_v34 = vld [vmem:[#allocation18_spill] sm:$0xff] }
 0x222   :  { %v3151_v27 = vpop.eup %2336  ;;  %v956_v1 = vmul.f32 1.442695, %v878_v57  ;;  %v879_v25 = vsub.f32 %v2914_v12, %v767_v58  ;;  %v1415_v12 = vpack.c.bf16 %v1359_v4, %v1358_v30  ;;  %v1375_v58 = vld [vmem:[#allocation9 + $0xf8] sm:$0xff] }
 0x223   :  { %1108 = vadd.xlane.f32.xlu0 %v3151_v27  ;;  %v797_v10 = vpop.xlane.xlu0 %796  ;;  %v3155_v59 = vpop.eup %2338  ;;  %2211 = vmatprep.subr.bf16.mxu1 %v1422_v16 }
 0x224   :  { %2348 = vpow2.f32 %v956_v1  ;;  %v894_v28 = vsub.f32 %v2918_v15, %v797_v10  ;;  %v958_v19 = vmul.f32 1.442695, %v879_v25  ;;  %2181 = vmatprep.subr.bf16.mxu0 %v1415_v12  ;;  %2212 = vmatpush3.bf16.msra.mxu1 %v1422_v16 }
 0x225   :  { %2350 = vpow2.f32 %v978_v48  ;;  %v799_v32 = vpop.xlane.xlu1 %798  ;;  %1078 = vadd.xlane.f32.xlu1 %v3155_v59  ;;  %2182 = vmatpush3.bf16.msra.mxu0 %v1415_v12  ;;  %v1374_v48 = vld [vmem:[#allocation9 + $0xf0] sm:$0xff] }
 0x226   :  { %v3159_v37 = vpop.eup %2340  ;;  %v988_v8 = vmul.f32 1.442695, %v894_v28  ;;  %v895_v57 = vsub.f32 %v2922_v17, %v799_v32  ;;  %v1423_v47 = vpack.c.bf16 %v1375_v58, %v1374_v48  ;;  %v3485_v28 = vld [vmem:[#allocation17_spill] sm:$0xff] }
 0x227   :  { %v3162_v15 = vpop.eup %2342  ;;  %1072 = vadd.xlane.f32.xlu0 %v3159_v37  ;;  %v761_v22 = vpop.xlane.xlu0 %760 }
 0x228   :  { %2352 = vpow2.f32 %v988_v8  ;;  %v876_v61 = vsub.f32 %v2931_v21, %v761_v22  ;;  %v990_v1 = vmul.f32 1.442695, %v895_v57  ;;  %2213 = vmatprep.subr.bf16.mxu1 %v1423_v47  ;;  %v3488_v57 = vld [vmem:[#allocation19_spill] sm:$0xff] }
 0x229   :  { %v763_v9 = vpop.xlane.xlu1 %762  ;;  %1110 = vadd.xlane.f32.xlu1 %v3162_v15  ;;  %2354 = vpow2.f32 %v958_v19  ;;  %2214 = vmatpush3.bf16.msra.mxu1 %v1423_v47 }
 0x22a   :  { %v3167_v17 = vpop.eup %2344  ;;  %v952_v25 = vmul.f32 1.442695, %v876_v61  ;;  %v877_v29 = vsub.f32 %v2935_v23, %v763_v9  ;;  %v3490_v9 = vld [vmem:[#allocation21_spill] sm:$0xff] }
 0x22b   :  { %1104 = vadd.xlane.f32.xlu0 %v3167_v17  ;;  %v793_v10 = vpop.xlane.xlu0 %792  ;;  %v3171_v21 = vpop.eup %2346 }
 0x22c   :  { %2356 = vpow2.f32 %v952_v25  ;;  %v892_v30 = vsub.f32 %v3485_v28, %v793_v10  ;;  %v954_v32 = vmul.f32 1.442695, %v877_v29  ;;  %v3491_v29 = vld [vmem:[#allocation20_spill] sm:$0xff] }
 0x22d   :  { %v795_v4 = vpop.xlane.xlu1 %794  ;;  %1074 = vadd.xlane.f32.xlu1 %v3171_v21  ;;  %2358 = vpow2.f32 %v990_v1 }
 0x22e   :  { %v3175_v36 = vpop.eup %2348  ;;  %v984_v12 = vmul.f32 1.442695, %v892_v30  ;;  %v893_v23 = vsub.f32 %v3487_v34, %v795_v4 }
 0x22f   :  { %3486 = vst [vmem:[#allocation17_spill] sm:$0xff] %v3175_v36  ;;  %v3178_v19 = vpop.eup %2350  ;;  %1084 = vadd.xlane.f32.xlu0 %v3175_v36  ;;  %v805_v8 = vpop.xlane.xlu0 %804 }
 0x230   :  { %2360 = vpow2.f32 %v984_v12  ;;  %v898_v16 = vsub.f32 %v3488_v57, %v805_v8  ;;  %v986_v48 = vmul.f32 1.442695, %v893_v23  ;;  %v3492_v12 = vld [vmem:[#allocation22_spill] sm:$0xff]  ;;  %v3494_v57 = vld [vmem:[#allocation23_spill] sm:$0xff] }
 0x231   :  { %1106 = vadd.xlane.f32.xlu1 %v3178_v19  ;;  %v807_v22 = vpop.xlane.xlu1 %806  ;;  %2362 = vpow2.f32 %v954_v32 }
 0x232   :  { %v3183_v61 = vpop.eup %2352  ;;  %v996_v58 = vmul.f32 1.442695, %v898_v16  ;;  %v899_v47 = vsub.f32 %v3490_v9, %v807_v22 }
 0x233   :  { %3489 = vst [vmem:[#allocation18_spill] sm:$0xff] %v3183_v61  ;;  %1116 = vadd.xlane.f32.xlu0 %v3183_v61  ;;  %v837_v1 = vpop.xlane.xlu0 %836  ;;  %v3187_v25 = vpop.eup %2354  ;;  %v3501_v61 = vld [vmem:[#allocation27_spill] sm:$0xff] }
 0x234   :  { %2364 = vpow2.f32 %v996_v58  ;;  %v914_v10 = vsub.f32 %v3491_v29, %v837_v1  ;;  %v998_v4 = vmul.f32 1.442695, %v899_v47  ;;  %v3496_v47 = vld [vmem:[#allocation24_spill] sm:$0xff] }
 0x235   :  { %1086 = vadd.xlane.f32.xlu1 %v3187_v25  ;;  %v839_v28 = vpop.xlane.xlu1 %838  ;;  %2366 = vpow2.f32 %v986_v48 }
 0x236   :  { %v3191_v30 = vpop.eup %2356  ;;  %v1028_v32 = vmul.f32 1.442695, %v914_v10  ;;  %v915_v34 = vsub.f32 %v3492_v12, %v839_v28  ;;  %v3497_v28 = vld [vmem:[#allocation25_spill] sm:$0xff] }
 0x237   :  { %1080 = vadd.xlane.f32.xlu0 %v3191_v30  ;;  %v801_v23 = vpop.xlane.xlu0 %800  ;;  %v3195_v8 = vpop.eup %2358 }
 0x238   :  { %3493 = vst [vmem:[#allocation19_spill] sm:$0xff] %v3195_v8  ;;  %2368 = vpow2.f32 %v1028_v32  ;;  %v896_v16 = vsub.f32 %v3494_v57, %v801_v23  ;;  %v1030_v9 = vmul.f32 1.442695, %v915_v34  ;;  %v3499_v34 = vld [vmem:[#allocation26_spill] sm:$0xff] }
 0x239   :  { %1118 = vadd.xlane.f32.xlu1 %v3195_v8  ;;  %v803_v22 = vpop.xlane.xlu1 %802  ;;  %2370 = vpow2.f32 %v998_v4  ;;  %v1376_v8 = vld [vmem:[#allocation9 + $0x100] sm:$0xff] }
 0x23a   :  { %v3199_v58 = vpop.eup %2360  ;;  %v992_v48 = vmul.f32 1.442695, %v896_v16  ;;  %v897_v1 = vsub.f32 %v3496_v47, %v803_v22 }
 0x23b   :  { %3495 = vst [vmem:[#allocation21_spill] sm:$0xff] %v3199_v58  ;;  %1112 = vadd.xlane.f32.xlu0 %v3199_v58  ;;  %v833_v29 = vpop.xlane.xlu0 %832  ;;  %v3203_v10 = vpop.eup %2362 }
 0x23c   :  { %2372 = vpow2.f32 %v992_v48  ;;  %v912_v32 = vsub.f32 %v3497_v28, %v833_v29  ;;  %v994_v57 = vmul.f32 1.442695, %v897_v1  ;;  %v3503_v1 = vld [vmem:[#allocation28_spill] sm:$0xff] }
 0x23d   :  { %1082 = vadd.xlane.f32.xlu1 %v3203_v10  ;;  %v835_v12 = vpop.xlane.xlu1 %834  ;;  %2374 = vpow2.f32 %v1030_v9 }
 0x23e   :  { %v3207_v23 = vpop.eup %2364  ;;  %v1024_v4 = vmul.f32 1.442695, %v912_v32  ;;  %v913_v16 = vsub.f32 %v3499_v34, %v835_v12 }
 0x23f   :  { %3498 = vst [vmem:[#allocation20_spill] sm:$0xff] %v3207_v23  ;;  %1124 = vadd.xlane.f32.xlu0 %v3207_v23  ;;  %v813_v22 = vpop.xlane.xlu0 %812  ;;  %v3211_v47 = vpop.eup %2366  ;;  %v3505_v23 = vld [vmem:[#allocation29_spill] sm:$0xff] }
 0x240   :  { %3500 = vst [vmem:[#allocation22_spill] sm:$0xff] %v3211_v47  ;;  %2376 = vpow2.f32 %v1024_v4  ;;  %v902_v48 = vsub.f32 %v3501_v61, %v813_v22  ;;  %v1026_v58 = vmul.f32 1.442695, %v913_v16  ;;  %v3506_v16 = vld [vmem:[#allocation30_spill] sm:$0xff] }
 0x241   :  { %1114 = vadd.xlane.f32.xlu1 %v3211_v47  ;;  %v815_v29 = vpop.xlane.xlu1 %814  ;;  %2378 = vpow2.f32 %v994_v57 }
 0x242   :  { %v3215_v28 = vpop.eup %2368  ;;  %v1004_v9 = vmul.f32 1.442695, %v902_v48  ;;  %v903_v32 = vsub.f32 %v3503_v1, %v815_v29 }
 0x243   :  { %3502 = vst [vmem:[#allocation23_spill] sm:$0xff] %v3215_v28  ;;  %1156 = vadd.xlane.f32.xlu0 %v3215_v28  ;;  %v845_v12 = vpop.xlane.xlu0 %844  ;;  %v3219_v34 = vpop.eup %2370  ;;  %v3507_v28 = vld [vmem:[#allocation31_spill] sm:$0xff] }
 0x244   :  { %3504 = vst [vmem:[#allocation24_spill] sm:$0xff] %v3219_v34  ;;  %2380 = vpow2.f32 %v1004_v9  ;;  %v918_v4 = vsub.f32 %v3505_v23, %v845_v12  ;;  %v1006_v47 = vmul.f32 1.442695, %v903_v32  ;;  %v1377_v23 = vld [vmem:[#allocation9 + $0x108] sm:$0xff] }
 0x245   :  { %1126 = vadd.xlane.f32.xlu1 %v3219_v34  ;;  %v847_v61 = vpop.xlane.xlu1 %846  ;;  %2382 = vpow2.f32 %v1026_v58  ;;  %v3231_v36 = vpack.c.bf16 %v1377_v23, %v1376_v8 }
 0x246   :  { %v3223_v22 = vpop.eup %2372  ;;  %v1036_v57 = vmul.f32 1.442695, %v918_v4  ;;  %v919_v48 = vsub.f32 %v3506_v16, %v847_v61  ;;  %v1392_v16 = vld [vmem:[#allocation9 + $0x180] sm:$0xff] }
 0x247   :  { %1120 = vadd.xlane.f32.xlu0 %v3223_v22  ;;  %v809_v29 = vpop.xlane.xlu0 %808  ;;  %v3227_v1 = vpop.eup %2374  ;;  %2231 = vmatprep.subr.bf16.mxu0 %v3231_v36 }
 0x248   :  { %2384 = vpow2.f32 %v1036_v57  ;;  %v900_v9 = vsub.f32 %v3507_v28, %v809_v29  ;;  %v1038_v12 = vmul.f32 1.442695, %v919_v48  ;;  %v1393_v48 = vld [vmem:[#allocation9 + $0x188] sm:$0xff] }
 0x249   :  { %1158 = vadd.xlane.f32.xlu1 %v3227_v1  ;;  %v811_v34 = vpop.xlane.xlu1 %810  ;;  %2386 = vpow2.f32 %v1006_v47 }
 0x24a   :  { %v3233_v58 = vpop.eup %2376  ;;  %v1000_v32 = vmul.f32 1.442695, %v900_v9  ;;  %v901_v4 = vsub.f32 %v2999_v24, %v811_v34  ;;  %v3245_v9 = vpack.c.bf16 %v1393_v48, %v1392_v16 }
 0x24b   :  { %1152 = vadd.xlane.f32.xlu0 %v3233_v58  ;;  %v841_v61 = vpop.xlane.xlu0 %840  ;;  %v3238_v28 = vpop.eup %2378 }
 0x24c   :  { %2388 = vpow2.f32 %v1000_v32  ;;  %v916_v57 = vsub.f32 %v3003_v38, %v841_v61  ;;  %v1002_v29 = vmul.f32 1.442695, %v901_v4  ;;  %2263 = vmatprep.subr.bf16.mxu1 %v3245_v9 }
 0x24d   :  { %2390 = vpow2.f32 %v1038_v12  ;;  %1122 = vadd.xlane.f32.xlu1 %v3238_v28  ;;  %v843_v8 = vpop.xlane.xlu1 %842 }
 0x24e   :  { %v3242_v47 = vpop.eup %2380  ;;  %v1032_v24 = vmul.f32 1.442695, %v916_v57  ;;  %v917_v34 = vsub.f32 %v3007_v0, %v843_v8 }
 0x24f   :  { %1132 = vadd.xlane.f32.xlu0 %v3242_v47  ;;  %v821_v23 = vpop.xlane.xlu0 %820  ;;  %v3248_v32 = vpop.eup %2382 }
 0x250   :  { %2392 = vpow2.f32 %v1032_v24  ;;  %v906_v38 = vsub.f32 %v3010_v39, %v821_v23  ;;  %v1034_v4 = vmul.f32 1.442695, %v917_v34 }
 0x251   :  { %1154 = vadd.xlane.f32.xlu1 %v3248_v32  ;;  %v823_v12 = vpop.xlane.xlu1 %822  ;;  %2394 = vpow2.f32 %v1002_v29 }
 0x252   :  { %v3253_v61 = vpop.eup %2384  ;;  %v1012_v0 = vmul.f32 1.442695, %v906_v38  ;;  %v907_v57 = vsub.f32 %v3015_v11, %v823_v12 }
 0x253   :  { %3508 = vst [vmem:[#allocation25_spill] sm:$0xff] %v3253_v61  ;;  %1164 = vadd.xlane.f32.xlu0 %v3253_v61  ;;  %v853_v16 = vpop.xlane.xlu0 %852  ;;  %v3257_v8 = vpop.eup %2386  ;;  %v1380_v61 = vld [vmem:[#allocation9 + $0x120] sm:$0xff] }
 0x254   :  { %2396 = vpow2.f32 %v1012_v0  ;;  %v922_v39 = vsub.f32 %v3018_v35, %v853_v16  ;;  %v1014_v23 = vmul.f32 1.442695, %v907_v57 }
 0x255   :  { %1134 = vadd.xlane.f32.xlu1 %v3257_v8  ;;  %v855_v48 = vpop.xlane.xlu1 %854  ;;  %2398 = vpow2.f32 %v1034_v4 }
 0x256   :  { %v3261_v24 = vpop.eup %2388  ;;  %v1044_v29 = vmul.f32 1.442695, %v922_v39  ;;  %v923_v34 = vsub.f32 %v3023_v42, %v855_v48 }
 0x257   :  { %v3264_v38 = vpop.eup %2390  ;;  %1128 = vadd.xlane.f32.xlu0 %v3261_v24  ;;  %v817_v11 = vpop.xlane.xlu0 %816 }
 0x258   :  { %2400 = vpow2.f32 %v1044_v29  ;;  %v904_v12 = vsub.f32 %v3027_v43, %v817_v11  ;;  %v1046_v16 = vmul.f32 1.442695, %v923_v34 }
 0x259   :  { %1166 = vadd.xlane.f32.xlu1 %v3264_v38  ;;  %v819_v35 = vpop.xlane.xlu1 %818  ;;  %2402 = vpow2.f32 %v1014_v23 }
 0x25a   :  { %v3269_v0 = vpop.eup %2392  ;;  %v1008_v4 = vmul.f32 1.442695, %v904_v12  ;;  %v905_v57 = vsub.f32 %v3031_v33, %v819_v35 }
 0x25b   :  { %1160 = vadd.xlane.f32.xlu0 %v3269_v0  ;;  %v849_v42 = vpop.xlane.xlu0 %848  ;;  %v3273_v39 = vpop.eup %2394 }
 0x25c   :  { %2404 = vpow2.f32 %v1008_v4  ;;  %v920_v48 = vsub.f32 %v3035_v53, %v849_v42  ;;  %v1010_v11 = vmul.f32 1.442695, %v905_v57 }
 0x25d   :  { %1130 = vadd.xlane.f32.xlu1 %v3273_v39  ;;  %v851_v43 = vpop.xlane.xlu1 %850  ;;  %2406 = vpow2.f32 %v1046_v16 }
 0x25e   :  { %v3277_v29 = vpop.eup %2396  ;;  %v1040_v23 = vmul.f32 1.442695, %v920_v48  ;;  %v921_v34 = vsub.f32 %v3039_v56, %v851_v43 }
 0x25f   :  { %3509 = vst [vmem:[#allocation26_spill] sm:$0xff] %v3277_v29  ;;  %1140 = vadd.xlane.f32.xlu0 %v3277_v29  ;;  %v829_v33 = vpop.xlane.xlu0 %828  ;;  %v3281_v12 = vpop.eup %2398 }
 0x260   :  { %2408 = vpow2.f32 %v1040_v23  ;;  %v910_v35 = vsub.f32 %v3042_v40, %v829_v33  ;;  %v1042_v42 = vmul.f32 1.442695, %v921_v34 }
 0x261   :  { %1162 = vadd.xlane.f32.xlu1 %v3281_v12  ;;  %v831_v53 = vpop.xlane.xlu1 %830  ;;  %2410 = vpow2.f32 %v1010_v11 }
 0x262   :  { %v3285_v4 = vpop.eup %2400  ;;  %v1020_v16 = vmul.f32 1.442695, %v910_v35  ;;  %v911_v57 = vsub.f32 %v3047_v51, %v831_v53 }
 0x263   :  { %3510 = vst [vmem:[#allocation27_spill] sm:$0xff] %v3285_v4  ;;  %1172 = vadd.xlane.f32.xlu0 %v3285_v4  ;;  %v861_v56 = vpop.xlane.xlu0 %860  ;;  %v3289_v48 = vpop.eup %2402 }
 0x264   :  { %3511 = vst [vmem:[#allocation28_spill] sm:$0xff] %v3289_v48  ;;  %2412 = vpow2.f32 %v1020_v16  ;;  %v1022_v23 = vmul.f32 1.442695, %v911_v57  ;;  %v926_v4 = vsub.f32 %v3050_v31, %v861_v56 }
 0x265   :  { %1142 = vadd.xlane.f32.xlu1 %v3289_v48  ;;  %v863_v43 = vpop.xlane.xlu1 %862  ;;  %2414 = vpow2.f32 %v1042_v42 }
 0x266   :  { %v3292_v40 = vpop.eup %2404  ;;  %2416 = vpow2.f32 %v1022_v23  ;;  %v927_v23 = vsub.f32 %v3055_v62, %v863_v43  ;;  %v1052_v31 = vmul.f32 1.442695, %v926_v4 }
 0x267   :  { %3512 = vst [vmem:[#allocation29_spill] sm:$0xff] %v3292_v40  ;;  %1136 = vadd.xlane.f32.xlu0 %v3292_v40  ;;  %v825_v11 = vpop.xlane.xlu0 %824  ;;  %v3295_v34 = vpop.eup %2406 }
 0x268   :  { %3513 = vst [vmem:[#allocation30_spill] sm:$0xff] %v3295_v34  ;;  %v908_v51 = vsub.f32 %v3059_v63, %v825_v11 }
 0x269   :  { %1174 = vadd.xlane.f32.xlu1 %v3295_v34  ;;  %v827_v33 = vpop.xlane.xlu1 %826 }
 0x26a   :  { %v3299_v35 = vpop.eup %2408  ;;  %v1016_v53 = vmul.f32 1.442695, %v908_v51  ;;  %v909_v16 = vsub.f32 %v3063_v26, %v827_v33 }
 0x26b   :  { %3514 = vst [vmem:[#allocation31_spill] sm:$0xff] %v3299_v35  ;;  %1168 = vadd.xlane.f32.xlu0 %v3299_v35  ;;  %v857_v42 = vpop.xlane.xlu0 %856  ;;  %v3303_v57 = vpop.eup %2410 }
 0x26c   :  { %3515 = vst [vmem:[#allocation32_spill] sm:$0xff] %v3303_v57  ;;  %2418 = vpow2.f32 %v1016_v53  ;;  %v1018_v29 = vmul.f32 1.442695, %v909_v16  ;;  %v924_v63 = vsub.f32 %v3067_v5, %v857_v42  ;;  %v1054_v5 = vmul.f32 1.442695, %v927_v23 }
 0x26d   :  { %1138 = vadd.xlane.f32.xlu1 %v3303_v57  ;;  %v859_v11 = vpop.xlane.xlu1 %858 }
 0x26e   :  { %v3308_v34 = vpop.eup %2412  ;;  %2420 = vpow2.f32 %v1018_v29  ;;  %v1048_v26 = vmul.f32 1.442695, %v924_v63  ;;  %v925_v51 = vsub.f32 %v3071_v7, %v859_v11 }
 0x26f   :  { %3516 = vst [vmem:[#allocation33_spill] sm:$0xff] %v3308_v34  ;;  %1148 = vadd.xlane.f32.xlu0 %v3308_v34  ;;  %v3313_v33 = vpop.eup %2414 }
 0x270   :  { %3517 = vst [vmem:[#allocation34_spill] sm:$0xff] %v3313_v33  ;;  %2422 = vpow2.f32 %v1048_v26  ;;  %v1050_v56 = vmul.f32 1.442695, %v925_v51  ;;  %v3316_v53 = vpop.eup %2416 }
 0x271   :  { %1170 = vadd.xlane.f32.xlu1 %v3313_v33  ;;  %3518 = vst [vmem:[#allocation35_spill] sm:$0xff] %v3316_v53 }
 0x272   :  { %2424 = vpow2.f32 %v1050_v56 }
 0x273   :  { %2426 = vpow2.f32 %v1052_v31 }
 0x274   :  { %2428 = vpow2.f32 %v1054_v5 }
 0x275   :  { %1150 = vadd.xlane.f32.xlu1 %v3316_v53 }
 0x276   :  { %v3319_v62 = vpop.eup %2418 }
 0x277   :  { %3519 = vst [vmem:[#allocation36_spill] sm:$0xff] %v3319_v62  ;;  %1144 = vadd.xlane.f32.xlu0 %v3319_v62 }
 0x278   :  { %v3322_v7 = vpop.eup %2420 }
 0x279   :  { %3520 = vst [vmem:[#allocation37_spill] sm:$0xff] %v3322_v7  ;;  %1146 = vadd.xlane.f32.xlu1 %v3322_v7 }
 0x27a   :  { %v3325_v29 = vpop.eup %2422 }
 0x27b   :  { %3521 = vst [vmem:[#allocation38_spill] sm:$0xff] %v3325_v29  ;;  %1176 = vadd.xlane.f32.xlu0 %v3325_v29 }
 0x27c   :  { %v3328_v4 = vpop.eup %2424 }
 0x27d   :  { %3522 = vst [vmem:[#allocation39_spill] sm:$0xff] %v3328_v4  ;;  %1178 = vadd.xlane.f32.xlu1 %v3328_v4  ;;  %v3331_v43 = vpop.eup %2426 }
 0x27e   :  { %3523 = vst [vmem:[#allocation40_spill] sm:$0xff] %v3331_v43  ;;  %v3334_v16 = vpop.eup %2428 }
 0x27f   :  { %1180 = vadd.xlane.f32.xlu0 %v3331_v43  ;;  %3524 = vst [vmem:[#allocation41_spill] sm:$0xff] %v3334_v16 }
 0x281   :  { %1182 = vadd.xlane.f32.xlu1 %v3334_v16 }
 0x28c   :  { %v1061_v42 = vpop.xlane.xlu0 %1060 }
 0x290   :  { %v1093_v63 = vpop.xlane.xlu0 %1092 }
 0x292   :  { %v1063_v11 = vpop.xlane.xlu1 %1062 }
 0x293   :  { %2430 = vrcp.f32 %v1063_v11 }
 0x294   :  { %v1057_v23 = vpop.xlane.xlu0 %1056 }
 0x295   :  { %2432 = vrcp.f32 %v1057_v23 }
 0x296   :  { %v1095_v26 = vpop.xlane.xlu1 %1094  ;;  %2434 = vrcp.f32 %v1061_v42 }
 0x298   :  { %v1089_v51 = vpop.xlane.xlu0 %1088 }
 0x29a   :  { %v1059_v31 = vpop.xlane.xlu1 %1058 }
 0x29b   :  { %2436 = vrcp.f32 %v1059_v31  ;;  %v1378_v31 = vld [vmem:[#allocation9 + $0x110] sm:$0xff] }
 0x29c   :  { %2438 = vrcp.f32 %v1095_v26  ;;  %v1069_v56 = vpop.xlane.xlu0 %1068 }
 0x29d   :  { %2440 = vrcp.f32 %v1089_v51  ;;  %v2431_v4 = vpop.eup %2430  ;;  %v1379_v51 = vld [vmem:[#allocation9 + $0x118] sm:$0xff] }
 0x29e   :  { %2442 = vrcp.f32 %v1093_v63  ;;  %v1091_v5 = vpop.xlane.xlu1 %1090  ;;  %v1191_v11 = vmul.f32 %v2431_v4, %v3091_v54  ;;  %v1425_v4 = vpack.c.bf16 %v1379_v51, %v1378_v31 }
 0x29f   :  { %2444 = vrcp.f32 %v1091_v5  ;;  %v2433_v29 = vpop.eup %2432 }
 0x2a0   :  { %v1101_v43 = vpop.xlane.xlu0 %1100  ;;  %v2435_v34 = vpop.eup %2434  ;;  %v1185_v42 = vmul.f32 %v2433_v29, %v3095_v3  ;;  %v1381_v29 = vld [vmem:[#allocation9 + $0x128] sm:$0xff] }
 0x2a1   :  { %v1189_v5 = vmul.f32 %v2435_v34, %v3082_v14  ;;  %v1394_v14 = vld [vmem:[#allocation9 + $0x190] sm:$0xff]  ;;  %v1395_v34 = vld [vmem:[#allocation9 + $0x198] sm:$0xff] }
 0x2a2   :  { %v1071_v16 = vpop.xlane.xlu1 %1070 }
 0x2a3   :  { %2446 = vrcp.f32 %v1071_v16  ;;  %v1313_v54 = vpack.c.bf16 %v1191_v11, %v1189_v5  ;;  %v1396_v11 = vld [vmem:[#allocation9 + $0x1a0] sm:$0xff] }
 0x2a4   :  { %v1065_v7 = vpop.xlane.xlu0 %1064 }
 0x2a5   :  { %v2437_v62 = vpop.eup %2436  ;;  %2448 = vrcp.f32 %v1065_v7 }
 0x2a6   :  { %v2439_v53 = vpop.eup %2438  ;;  %v1103_v23 = vpop.xlane.xlu1 %1102  ;;  %v1187_v26 = vmul.f32 %v2437_v62, %v3105_v44  ;;  %2450 = vrcp.f32 %v1069_v56  ;;  %v1382_v56 = vld [vmem:[#allocation9 + $0x130] sm:$0xff] }
 0x2a7   :  { %v2441_v63 = vpop.eup %2440  ;;  %v1223_v48 = vmul.f32 %v2439_v53, %v3099_v13 }
 0x2a8   :  { %v2443_v33 = vpop.eup %2442  ;;  %v1097_v35 = vpop.xlane.xlu0 %1096  ;;  %v1312_v57 = vpack.c.bf16 %v1187_v26, %v1185_v42  ;;  %v1217_v44 = vmul.f32 %v2441_v63, %v3102_v2  ;;  %v1433_v2 = vpack.c.bf16 %v1395_v34, %v1394_v14  ;;  %v1398_v42 = vld [vmem:[#allocation9 + $0x1b0] sm:$0xff]  ;;  %v1399_v26 = vld [vmem:[#allocation9 + $0x1b8] sm:$0xff] }
 0x2a9   :  { %v2445_v40 = vpop.eup %2444  ;;  %v1221_v16 = vmul.f32 %v2443_v33, %v3087_v49  ;;  %v1397_v49 = vld [vmem:[#allocation9 + $0x1a8] sm:$0xff] }
 0x2aa   :  { %v1067_v3 = vpop.xlane.xlu1 %1066  ;;  %2183 = vmatprep.mubr.bf16.mxu0 %v1312_v57  ;;  %v1219_v62 = vmul.f32 %v2445_v40, %v3115_v55  ;;  %v1426_v57 = vpack.c.bf16 %v1381_v29, %v1380_v61  ;;  %v1383_v40 = vld [vmem:[#allocation9 + $0x138] sm:$0xff]  ;;  %v1384_v61 = vld [vmem:[#allocation9 + $0x140] sm:$0xff] }
 0x2ab   :  { %2452 = vrcp.f32 %v1067_v3  ;;  %2184 = vmatmul.mubr.bf16.vlgmr.msra.gmra.mrb[32].mxu0 %v1313_v54  ;;  %v1321_v7 = vpack.c.bf16 %v1223_v48, %v1221_v16  ;;  %v1434_v48 = vpack.c.bf16 %v1397_v49, %v1396_v11  ;;  %v1386_v3 = vld [vmem:[#allocation9 + $0x150] sm:$0xff]  ;;  %v1400_v16 = vld [vmem:[#allocation9 + $0x1c0] sm:$0xff] }
 0x2ac   :  { %2454 = vrcp.f32 %v1103_v23  ;;  %v3345_v13 = vpop.xlane.xlu0 %1076  ;;  %v1320_v53 = vpack.c.bf16 %v1219_v62, %v1217_v44  ;;  %2232 = vmatpush3.bf16.msra.mxu0 %v3231_v36  ;;  %v1427_v36 = vpack.c.bf16 %v1383_v40, %v1382_v56  ;;  %v1387_v44 = vld [vmem:[#allocation9 + $0x158] sm:$0xff] }
 0x2ad   :  { %2456 = vrcp.f32 %v1097_v35  ;;  %2233 = vmatprep.subr.bf16.mxu0 %v1425_v4  ;;  %v2447_v35 = vpop.eup %2446 }
 0x2ae   :  { %2458 = vrcp.f32 %v1101_v43  ;;  %v1099_v55 = vpop.xlane.xlu1 %1098  ;;  %2215 = vmatprep.mubr.bf16.mxu1 %v1320_v53  ;;  %v1385_v43 = vld [vmem:[#allocation9 + $0x148] sm:$0xff]  ;;  %v1199_v54 = vmul.f32 %v2447_v35, %v3123_v45 }
 0x2af   :  { %2460 = vrcp.f32 %v1099_v55  ;;  %2216 = vmatmul.mubr.bf16.vlgmr.msra.gmra.mrb[32].mxu1 %v1321_v7  ;;  %v2449_v31 = vpop.eup %2448  ;;  %v1401_v53 = vld [vmem:[#allocation9 + $0x1c8] sm:$0xff]  ;;  %v1429_v55 = vpack.c.bf16 %v1387_v44, %v1386_v3  ;;  %v1406_v44 = vld [vmem:[#allocation9 + $0x1f0] sm:$0xff] }
 0x2b0   :  { %v3348_v33 = vpop.xlane.xlu0 %1108  ;;  %2234 = vmatpush3.bf16.msra.mxu0 %v1425_v4  ;;  %2264 = vmatpush3.bf16.msra.mxu1 %v3245_v9  ;;  %v2451_v51 = vpop.eup %2450  ;;  %v1428_v9 = vpack.c.bf16 %v1385_v43, %v1384_v61  ;;  %v1435_v4 = vpack.c.bf16 %v1399_v26, %v1398_v42  ;;  %v1193_v14 = vmul.f32 %v2449_v31, %v3127_v50  ;;  %v1390_v31 = vld [vmem:[#allocation9 + $0x170] sm:$0xff] }
 0x2b1   :  { %2235 = vmatprep.subr.bf16.mxu0 %v1426_v57  ;;  %2265 = vmatprep.subr.bf16.mxu1 %v1433_v2  ;;  %v1436_v50 = vpack.c.bf16 %v1401_v53, %v1400_v16 }
 0x2b2   :  { %v1079_v23 = vpop.xlane.xlu1 %1078 }
 0x2b3   :  { %2462 = vrcp.f32 %v1079_v23  ;;  %v1403_v23 = vld [vmem:[#allocation9 + $0x1d8] sm:$0xff] }
 0x2b4   :  { %v1073_v63 = vpop.xlane.xlu0 %1072  ;;  %2236 = vmatpush3.bf16.msra.mxu0 %v1426_v57  ;;  %2266 = vmatpush3.bf16.msra.mxu1 %v1433_v2  ;;  %v1197_v57 = vmul.f32 %v2451_v51, %v3111_v52  ;;  %v1391_v51 = vld [vmem:[#allocation9 + $0x178] sm:$0xff] }
 0x2b5   :  { %v2453_v5 = vpop.eup %2452  ;;  %2237 = vmatprep.subr.bf16.mxu0 %v1427_v36  ;;  %2267 = vmatprep.subr.bf16.mxu1 %v1434_v48  ;;  %2464 = vrcp.f32 %v1073_v63  ;;  %v1404_v63 = vld [vmem:[#allocation9 + $0x1e0] sm:$0xff] }
 0x2b6   :  { %v2455_v62 = vpop.eup %2454  ;;  %v1111_v29 = vpop.xlane.xlu1 %1110  ;;  %v1195_v34 = vmul.f32 %v2453_v5, %v3139_v20  ;;  %v1315_v11 = vpack.c.bf16 %v1199_v54, %v1197_v57  ;;  %v1388_v20 = vld [vmem:[#allocation9 + $0x160] sm:$0xff]  ;;  %2466 = vrcp.f32 %v3345_v13  ;;  %v1405_v5 = vld [vmem:[#allocation9 + $0x1e8] sm:$0xff]  ;;  %v1431_v54 = vpack.c.bf16 %v1391_v51, %v1390_v31 }
 0x2b7   :  { %v2457_v7 = vpop.eup %2456  ;;  %v1231_v49 = vmul.f32 %v2455_v62, %v3130_v60  ;;  %v1407_v62 = vld [vmem:[#allocation9 + $0x1f8] sm:$0xff]  ;;  %v3525_v51 = vld [vmem:[#allocation17_spill] sm:$0xff] }
 0x2b8   :  { %v2459_v2 = vpop.eup %2458  ;;  %v1105_v45 = vpop.xlane.xlu0 %1104  ;;  %v1314_v56 = vpack.c.bf16 %v1195_v34, %v1193_v14  ;;  %2238 = vmatpush3.bf16.msra.mxu0 %v1427_v36  ;;  %2268 = vmatpush3.bf16.msra.mxu1 %v1434_v48  ;;  %v1225_v52 = vmul.f32 %v2457_v7, %v3135_v18  ;;  %v1389_v36 = vld [vmem:[#allocation9 + $0x168] sm:$0xff]  ;;  %v1402_v48 = vld [vmem:[#allocation9 + $0x1d0] sm:$0xff]  ;;  %v1439_v53 = vpack.c.bf16 %v1407_v62, %v1406_v44  ;;  %v3527_v62 = vld [vmem:[#allocation21_spill] sm:$0xff] }
 0x2b9   :  { %v2461_v40 = vpop.eup %2460  ;;  %2239 = vmatprep.subr.bf16.mxu0 %v1428_v9  ;;  %2269 = vmatprep.subr.bf16.mxu1 %v1435_v4  ;;  %v1229_v43 = vmul.f32 %v2459_v2, %v3119_v41  ;;  %v1430_v26 = vpack.c.bf16 %v1389_v36, %v1388_v20  ;;  %v1437_v18 = vpack.c.bf16 %v1403_v23, %v1402_v48 }
 0x2ba   :  { %v1075_v61 = vpop.xlane.xlu1 %1074  ;;  %2187 = vmatprep.mubr.bf16.mxu0 %v1314_v56  ;;  %v1227_v35 = vmul.f32 %v2461_v40, %v3146_v6 }
 0x2bb   :  { %2468 = vrcp.f32 %v1075_v61  ;;  %2188 = vmatmul.mubr.bf16.gmra.mrb[36].mxu0 %v1315_v11  ;;  %v1323_v13 = vpack.c.bf16 %v1231_v49, %v1229_v43 }
 0x2bc   :  { %2470 = vrcp.f32 %v1111_v29  ;;  %v1085_v60 = vpop.xlane.xlu0 %1084  ;;  %v1322_v42 = vpack.c.bf16 %v1227_v35, %v1225_v52  ;;  %2240 = vmatpush3.bf16.msra.mxu0 %v1428_v9  ;;  %2270 = vmatpush3.bf16.msra.mxu1 %v1435_v4  ;;  %v1438_v9 = vpack.c.bf16 %v1405_v5, %v1404_v63 }
 0x2bd   :  { %2472 = vrcp.f32 %v1105_v45  ;;  %2241 = vmatprep.subr.bf16.mxu0 %v1429_v55  ;;  %2271 = vmatprep.subr.bf16.mxu1 %v1436_v50  ;;  %v2463_v4 = vpop.eup %2462 }
 0x2be   :  { %2474 = vrcp.f32 %v3348_v33  ;;  %v1107_v6 = vpop.xlane.xlu1 %1106  ;;  %2219 = vmatprep.mubr.bf16.mxu1 %v1322_v42  ;;  %v1207_v16 = vmul.f32 %v2463_v4, %v3155_v59 }
 0x2bf   :  { %2476 = vrcp.f32 %v1107_v6  ;;  %2220 = vmatmul.mubr.bf16.gmra.mrb[36].mxu1 %v1323_v13  ;;  %v2465_v29 = vpop.eup %2464 }
 0x2c0   :  { %v1117_v41 = vpop.xlane.xlu0 %1116  ;;  %2242 = vmatpush3.bf16.msra.mxu0 %v1429_v55  ;;  %2272 = vmatpush3.bf16.msra.mxu1 %v1436_v50  ;;  %v2467_v33 = vpop.eup %2466  ;;  %v1201_v2 = vmul.f32 %v2465_v29, %v3159_v37 }
 0x2c1   :  { %2243 = vmatprep.subr.bf16.mxu0 %v1430_v26  ;;  %2273 = vmatprep.subr.bf16.mxu1 %v1437_v18  ;;  %v1205_v55 = vmul.f32 %v2467_v33, %v3143_v46 }
 0x2c2   :  { %v1087_v3 = vpop.xlane.xlu1 %1086 }
 0x2c3   :  { %2478 = vrcp.f32 %v1087_v3  ;;  %v1317_v59 = vpack.c.bf16 %v1207_v16, %v1205_v55  ;;  %v3526_v3 = vld [vmem:[#allocation19_spill] sm:$0xff] }
 0x2c4   :  { %v1081_v14 = vpop.xlane.xlu0 %1080  ;;  %2244 = vmatpush3.bf16.msra.mxu0 %v1430_v26  ;;  %2274 = vmatpush3.bf16.msra.mxu1 %v1437_v18 }
 0x2c5   :  { %v2469_v34 = vpop.eup %2468  ;;  %2245 = vmatprep.subr.bf16.mxu0 %v1431_v54  ;;  %2275 = vmatprep.subr.bf16.mxu1 %v1438_v9  ;;  %2480 = vrcp.f32 %v1081_v14 }
 0x2c6   :  { %v2471_v7 = vpop.eup %2470  ;;  %v1119_v57 = vpop.xlane.xlu1 %1118  ;;  %v1203_v45 = vmul.f32 %v2469_v34, %v3171_v21  ;;  %2482 = vrcp.f32 %v1085_v60 }
 0x2c7   :  { %v2473_v56 = vpop.eup %2472  ;;  %v1239_v20 = vmul.f32 %v2471_v7, %v3162_v15 }
 0x2c8   :  { %v2475_v40 = vpop.eup %2474  ;;  %v1113_v11 = vpop.xlane.xlu0 %1112  ;;  %v1316_v49 = vpack.c.bf16 %v1203_v45, %v1201_v2  ;;  %2246 = vmatpush3.bf16.msra.mxu0 %v1431_v54  ;;  %2276 = vmatpush3.bf16.msra.mxu1 %v1438_v9  ;;  %v1233_v37 = vmul.f32 %v2473_v56, %v3167_v17 }
 0x2c9   :  { %v2477_v50 = vpop.eup %2476  ;;  %2277 = vmatprep.subr.bf16.mxu1 %v1439_v53  ;;  %v1237_v46 = vmul.f32 %v2475_v40, %v3151_v27 }
 0x2ca   :  { %v1083_v61 = vpop.xlane.xlu1 %1082  ;;  %2191 = vmatprep.mubr.bf16.mxu0 %v1316_v49  ;;  %v1235_v21 = vmul.f32 %v2477_v50, %v3178_v19  ;;  %v3530_v49 = vld [vmem:[#allocation24_spill] sm:$0xff] }
 0x2cb   :  { %2484 = vrcp.f32 %v1083_v61  ;;  %2192 = vmatmul.mubr.bf16.gmra.mrb[40].mxu0 %v1317_v59  ;;  %v1325_v36 = vpack.c.bf16 %v1239_v20, %v1237_v46  ;;  %v3531_v46 = vld [vmem:[#allocation20_spill] sm:$0xff] }
 0x2cc   :  { %2486 = vrcp.f32 %v1119_v57  ;;  %v1125_v52 = vpop.xlane.xlu0 %1124  ;;  %v1324_v35 = vpack.c.bf16 %v1235_v21, %v1233_v37  ;;  %2278 = vmatpush3.bf16.msra.mxu1 %v1439_v53 }
 0x2cd   :  { %2488 = vrcp.f32 %v1113_v11  ;;  %v2479_v23 = vpop.eup %2478 }
 0x2ce   :  { %2490 = vrcp.f32 %v1117_v41  ;;  %v1115_v15 = vpop.xlane.xlu1 %1114  ;;  %2223 = vmatprep.mubr.bf16.mxu1 %v1324_v35  ;;  %v1215_v27 = vmul.f32 %v2479_v23, %v3187_v25 }
 0x2cf   :  { %2492 = vrcp.f32 %v1115_v15  ;;  %2224 = vmatmul.mubr.bf16.gmra.mrb[40].mxu1 %v1325_v36  ;;  %v2481_v43 = vpop.eup %2480 }
 0x2d0   :  { %v1157_v48 = vpop.xlane.xlu0 %1156  ;;  %v2483_v19 = vpop.eup %2482  ;;  %v1209_v18 = vmul.f32 %v2481_v43, %v3191_v30  ;;  %v3528_v30 = vld [vmem:[#allocation22_spill] sm:$0xff] }
 0x2d1   :  { %v1213_v63 = vmul.f32 %v2483_v19, %v3525_v51 }
 0x2d2   :  { %v1127_v17 = vpop.xlane.xlu1 %1126 }
 0x2d3   :  { %2494 = vrcp.f32 %v1127_v17  ;;  %v1319_v4 = vpack.c.bf16 %v1215_v27, %v1213_v63 }
 0x2d4   :  { %v1121_v60 = vpop.xlane.xlu0 %1120 }
 0x2d5   :  { %v2485_v42 = vpop.eup %2484  ;;  %2496 = vrcp.f32 %v1121_v60 }
 0x2d6   :  { %v2487_v13 = vpop.eup %2486  ;;  %v1159_v26 = vpop.xlane.xlu1 %1158  ;;  %v1211_v31 = vmul.f32 %v2485_v42, %v3203_v10  ;;  %2498 = vrcp.f32 %v1125_v52  ;;  %v3529_v10 = vld [vmem:[#allocation18_spill] sm:$0xff] }
 0x2d7   :  { %v2489_v6 = vpop.eup %2488  ;;  %v1247_v44 = vmul.f32 %v2487_v13, %v3526_v3 }
 0x2d8   :  { %v2491_v5 = vpop.eup %2490  ;;  %v1153_v41 = vpop.xlane.xlu0 %1152  ;;  %v1318_v54 = vpack.c.bf16 %v1211_v31, %v1209_v18  ;;  %v1241_v29 = vmul.f32 %v2489_v6, %v3527_v62 }
 0x2d9   :  { %v2493_v9 = vpop.eup %2492  ;;  %v1245_v14 = vmul.f32 %v2491_v5, %v3529_v10 }
 0x2da   :  { %v1123_v25 = vpop.xlane.xlu1 %1122  ;;  %2195 = vmatprep.mubr.bf16.mxu0 %v1318_v54  ;;  %v1243_v33 = vmul.f32 %v2493_v9, %v3528_v30 }
 0x2db   :  { %2500 = vrcp.f32 %v1123_v25  ;;  %2196 = vmatmul.mubr.bf16.gmra.mrb[44].mxu0 %v1319_v4  ;;  %v1327_v53 = vpack.c.bf16 %v1247_v44, %v1245_v14 }
 0x2dc   :  { %2502 = vrcp.f32 %v1159_v26  ;;  %v1133_v34 = vpop.xlane.xlu0 %1132  ;;  %v1326_v16 = vpack.c.bf16 %v1243_v33, %v1241_v29 }
 0x2dd   :  { %2504 = vrcp.f32 %v1153_v41  ;;  %v2495_v2 = vpop.eup %2494 }
 0x2de   :  { %2506 = vrcp.f32 %v1157_v48  ;;  %v1155_v7 = vpop.xlane.xlu1 %1154  ;;  %2227 = vmatprep.mubr.bf16.mxu1 %v1326_v16  ;;  %v1255_v50 = vmul.f32 %v2495_v2, %v3530_v49 }
 0x2df   :  { %2508 = vrcp.f32 %v1155_v7  ;;  %2228 = vmatmul.mubr.bf16.gmra.mrb[44].mxu1 %v1327_v53  ;;  %v2497_v56 = vpop.eup %2496 }
 0x2e0   :  { %v1165_v57 = vpop.xlane.xlu0 %1164  ;;  %v2499_v55 = vpop.eup %2498  ;;  %v1249_v61 = vmul.f32 %v2497_v56, %v3223_v22 }
 0x2e1   :  { %v1253_v52 = vmul.f32 %v2499_v55, %v3531_v46 }
 0x2e2   :  { %v1135_v45 = vpop.xlane.xlu1 %1134 }
 0x2e3   :  { %2510 = vrcp.f32 %v1135_v45  ;;  %v1329_v17 = vpack.c.bf16 %v1255_v50, %v1253_v52  ;;  %v3534_v45 = vld [vmem:[#allocation28_spill] sm:$0xff] }
 0x2e4   :  { %v1129_v40 = vpop.xlane.xlu0 %1128  ;;  %v3536_v50 = vld [vmem:[#allocation32_spill] sm:$0xff] }
 0x2e5   :  { %v2501_v11 = vpop.eup %2500  ;;  %2512 = vrcp.f32 %v1129_v40 }
 0x2e6   :  { %v2503_v59 = vpop.eup %2502  ;;  %v1167_v20 = vpop.xlane.xlu1 %1166  ;;  %v1251_v37 = vmul.f32 %v2501_v11, %v3238_v28  ;;  %2514 = vrcp.f32 %v1133_v34  ;;  %v3532_v28 = vld [vmem:[#allocation23_spill] sm:$0xff]  ;;  %v3535_v11 = vld [vmem:[#allocation29_spill] sm:$0xff] }
 0x2e7   :  { %v2505_v21 = vpop.eup %2504  ;;  %v1287_v23 = vmul.f32 %v2503_v59, %v3227_v1 }
 0x2e8   :  { %v2507_v35 = vpop.eup %2506  ;;  %v1161_v36 = vpop.xlane.xlu0 %1160  ;;  %v1328_v15 = vpack.c.bf16 %v1251_v37, %v1249_v61  ;;  %v1281_v19 = vmul.f32 %v2505_v21, %v3233_v58  ;;  %v3537_v61 = vld [vmem:[#allocation26_spill] sm:$0xff] }
 0x2e9   :  { %v2509_v48 = vpop.eup %2508  ;;  %v1285_v60 = vmul.f32 %v2507_v35, %v3532_v28  ;;  %v3541_v28 = vld [vmem:[#allocation27_spill] sm:$0xff] }
 0x2ea   :  { %v1131_v43 = vpop.xlane.xlu1 %1130  ;;  %2247 = vmatprep.mubr.bf16.mxu0 %v1328_v15  ;;  %v1283_v22 = vmul.f32 %v2509_v48, %v3248_v32  ;;  %v3538_v15 = vld [vmem:[#allocation30_spill] sm:$0xff] }
 0x2eb   :  { %2516 = vrcp.f32 %v1131_v43  ;;  %2248 = vmatmul.mubr.bf16.vlgmr.msra.gmra.mrb[48].mxu0 %v1329_v17  ;;  %v1337_v13 = vpack.c.bf16 %v1287_v23, %v1285_v60  ;;  %v3539_v17 = vld [vmem:[#allocation31_spill] sm:$0xff] }
 0x2ec   :  { %2518 = vrcp.f32 %v1167_v20  ;;  %v1141_v42 = vpop.xlane.xlu0 %1140  ;;  %v1336_v27 = vpack.c.bf16 %v1283_v22, %v1281_v19  ;;  %v3540_v19 = vld [vmem:[#allocation34_spill] sm:$0xff] }
 0x2ed   :  { %2520 = vrcp.f32 %v1161_v36  ;;  %v2511_v18 = vpop.eup %2510 }
 0x2ee   :  { %2522 = vrcp.f32 %v1165_v57  ;;  %v1163_v1 = vpop.xlane.xlu1 %1162  ;;  %2279 = vmatprep.mubr.bf16.mxu1 %v1336_v27  ;;  %v1263_v63 = vmul.f32 %v2511_v18, %v3257_v8 }
 0x2ef   :  { %2524 = vrcp.f32 %v1163_v1  ;;  %2280 = vmatmul.mubr.bf16.vlgmr.msra.gmra.mrb[48].mxu1 %v1337_v13  ;;  %v2513_v58 = vpop.eup %2512 }
 0x2f0   :  { %v1173_v26 = vpop.xlane.xlu0 %1172  ;;  %v2515_v6 = vpop.eup %2514  ;;  %v1257_v54 = vmul.f32 %v2513_v58, %v3261_v24 }
 0x2f1   :  { %v1261_v3 = vmul.f32 %v2515_v6, %v3242_v47  ;;  %v3542_v6 = vld [vmem:[#allocation35_spill] sm:$0xff] }
 0x2f2   :  { %v1143_v31 = vpop.xlane.xlu1 %1142 }
 0x2f3   :  { %2526 = vrcp.f32 %v1143_v31  ;;  %v1331_v29 = vpack.c.bf16 %v1263_v63, %v1261_v3 }
 0x2f4   :  { %v1137_v32 = vpop.xlane.xlu0 %1136 }
 0x2f5   :  { %v2517_v51 = vpop.eup %2516  ;;  %2528 = vrcp.f32 %v1137_v32 }
 0x2f6   :  { %v2519_v5 = vpop.eup %2518  ;;  %v1175_v41 = vpop.xlane.xlu1 %1174  ;;  %v1259_v9 = vmul.f32 %v2517_v51, %v3273_v39  ;;  %2530 = vrcp.f32 %v1141_v42  ;;  %v3533_v39 = vld [vmem:[#allocation25_spill] sm:$0xff]  ;;  %v3543_v51 = vld [vmem:[#allocation36_spill] sm:$0xff] }
 0x2f7   :  { %v2521_v4 = vpop.eup %2520  ;;  %v1295_v30 = vmul.f32 %v2519_v5, %v3264_v38  ;;  %v3544_v5 = vld [vmem:[#allocation37_spill] sm:$0xff] }
 0x2f8   :  { %v2523_v44 = vpop.eup %2522  ;;  %v1330_v25 = vpack.c.bf16 %v1259_v9, %v1257_v54  ;;  %v1169_v33 = vpop.xlane.xlu0 %1168  ;;  %v1289_v10 = vmul.f32 %v2521_v4, %v3269_v0  ;;  %v3545_v9 = vld [vmem:[#allocation33_spill] sm:$0xff] }
 0x2f9   :  { %v2525_v62 = vpop.eup %2524  ;;  %v1293_v47 = vmul.f32 %v2523_v44, %v3533_v39  ;;  %v3548_v39 = vld [vmem:[#allocation40_spill] sm:$0xff] }
 0x2fa   :  { %v1139_v8 = vpop.xlane.xlu1 %1138  ;;  %2251 = vmatprep.mubr.bf16.mxu0 %v1330_v25  ;;  %v1291_v24 = vmul.f32 %v2525_v62, %v3281_v12  ;;  %v3546_v62 = vld [vmem:[#allocation38_spill] sm:$0xff] }
 0x2fb   :  { %2532 = vrcp.f32 %v1139_v8  ;;  %2252 = vmatmul.mubr.bf16.gmra.mrb[52].mxu0 %v1331_v29  ;;  %v1339_v34 = vpack.c.bf16 %v1295_v30, %v1293_v47  ;;  %v3547_v30 = vld [vmem:[#allocation39_spill] sm:$0xff] }
 0x2fc   :  { %2534 = vrcp.f32 %v1175_v41  ;;  %v1338_v14 = vpack.c.bf16 %v1291_v24, %v1289_v10  ;;  %v1149_v38 = vpop.xlane.xlu0 %1148 }
 0x2fd   :  { %2536 = vrcp.f32 %v1169_v33  ;;  %v2527_v53 = vpop.eup %2526 }
 0x2fe   :  { %2538 = vrcp.f32 %v1173_v26  ;;  %v1171_v16 = vpop.xlane.xlu1 %1170  ;;  %2283 = vmatprep.mubr.bf16.mxu1 %v1338_v14  ;;  %v1271_v56 = vmul.f32 %v2527_v53, %v3534_v45  ;;  %v3549_v14 = vld [vmem:[#allocation41_spill] sm:$0xff] }
 0x2ff   :  { %2540 = vrcp.f32 %v1171_v16  ;;  %2284 = vmatmul.mubr.bf16.gmra.mrb[52].mxu1 %v1339_v34  ;;  %v2529_v57 = vpop.eup %2528 }
 0x300   :  { %v2531_v0 = vpop.eup %2530  ;;  %v1265_v49 = vmul.f32 %v2529_v57, %v3535_v11 }
 0x301   :  { %v1269_v37 = vmul.f32 %v2531_v0, %v3537_v61 }
 0x302   :  { %v1151_v7 = vpop.xlane.xlu1 %1150 }
 0x303   :  { %2542 = vrcp.f32 %v1151_v7  ;;  %v1333_v36 = vpack.c.bf16 %v1271_v56, %v1269_v37 }
 0x304   :  { %v1145_v12 = vpop.xlane.xlu0 %1144 }
 0x305   :  { %v2533_v2 = vpop.eup %2532  ;;  %2544 = vrcp.f32 %v1145_v12 }
 0x306   :  { %v2535_v55 = vpop.eup %2534  ;;  %2546 = vrcp.f32 %v1149_v38  ;;  %v1147_v40 = vpop.xlane.xlu1 %1146  ;;  %v1267_v59 = vmul.f32 %v2533_v2, %v3536_v50 }
 0x307   :  { %v2537_v20 = vpop.eup %2536  ;;  %2548 = vrcp.f32 %v1147_v40  ;;  %v1303_v48 = vmul.f32 %v2535_v55, %v3538_v15 }
 0x308   :  { %v2539_v21 = vpop.eup %2538  ;;  %v1177_v46 = vpop.xlane.xlu0 %1176  ;;  %v1332_v52 = vpack.c.bf16 %v1267_v59, %v1265_v49  ;;  %v1297_v43 = vmul.f32 %v2537_v20, %v3539_v17 }
 0x309   :  { %v2541_v35 = vpop.eup %2540  ;;  %2550 = vrcp.f32 %v1177_v46  ;;  %v1301_v60 = vmul.f32 %v2539_v21, %v3541_v28 }
 0x30a   :  { %2255 = vmatprep.mubr.bf16.mxu0 %v1332_v52  ;;  %v1179_v23 = vpop.xlane.xlu1 %1178  ;;  %v1299_v22 = vmul.f32 %v2541_v35, %v3540_v19 }
 0x30b   :  { %2552 = vrcp.f32 %v1179_v23  ;;  %2256 = vmatmul.mubr.bf16.gmra.mrb[56].mxu0 %v1333_v36  ;;  %v1341_v13 = vpack.c.bf16 %v1303_v48, %v1301_v60 }
 0x30c   :  { %v1181_v42 = vpop.xlane.xlu0 %1180  ;;  %v1340_v27 = vpack.c.bf16 %v1299_v22, %v1297_v43 }
 0x30d   :  { %2554 = vrcp.f32 %v1181_v42  ;;  %v2543_v1 = vpop.eup %2542 }
 0x30e   :  { %2287 = vmatprep.mubr.bf16.mxu1 %v1340_v27  ;;  %v1183_v26 = vpop.xlane.xlu1 %1182  ;;  %v1279_v32 = vmul.f32 %v2543_v1, %v3542_v6 }
 0x30f   :  { %v2545_v18 = vpop.eup %2544  ;;  %2556 = vrcp.f32 %v1183_v26  ;;  %2288 = vmatmul.mubr.bf16.gmra.mrb[56].mxu1 %v1341_v13 }
 0x310   :  { %v2547_v31 = vpop.eup %2546  ;;  %v1273_v63 = vmul.f32 %v2545_v18, %v3543_v51 }
 0x311   :  { %v2549_v58 = vpop.eup %2548  ;;  %v1277_v4 = vmul.f32 %v2547_v31, %v3545_v9 }
 0x312   :  { %v1275_v41 = vmul.f32 %v2549_v58, %v3544_v5 }
 0x313   :  { %v2551_v54 = vpop.eup %2550  ;;  %v1335_v25 = vpack.c.bf16 %v1279_v32, %v1277_v4 }
 0x314   :  { %v1334_v3 = vpack.c.bf16 %v1275_v41, %v1273_v63  ;;  %v1305_v29 = vmul.f32 %v2551_v54, %v3546_v62 }
 0x315   :  { %v2553_v44 = vpop.eup %2552 }
 0x316   :  { %2259 = vmatprep.mubr.bf16.mxu0 %v1334_v3  ;;  %v1307_v33 = vmul.f32 %v2553_v44, %v3547_v30 }
 0x317   :  { %v2555_v8 = vpop.eup %2554  ;;  %2260 = vmatmul.mubr.bf16.gmra.mrb[60].mxu0 %v1335_v25 }
 0x318   :  { %v1342_v10 = vpack.c.bf16 %v1307_v33, %v1305_v29  ;;  %v1309_v47 = vmul.f32 %v2555_v8, %v3548_v39 }
 0x319   :  { %v2557_v24 = vpop.eup %2556 }
 0x31a   :  { %2291 = vmatprep.mubr.bf16.mxu1 %v1342_v10  ;;  %v1311_v34 = vmul.f32 %v2557_v24, %v3549_v14 }
 0x31c   :  { %v1343_v16 = vpack.c.bf16 %v1311_v34, %v1309_v47 }
 0x31e   :  { %2292 = vmatmul.mubr.bf16.gmra.mrb[60].mxu1 %v1343_v16 }
 0x37e   :  { %v2185_v38 = vpop.f32.mrb[32].mxu0 }
 0x37f   :  { %1830 = vst [vmem:[#allocation12 + $0x10] sm:$0xff] %v2185_v38  ;;  %v1474_v53 = vpop.f32.mrb[33].mxu0 }
 0x380   :  { %1828 = vst [vmem:[#allocation12] sm:$0xff] %v1474_v53  ;;  %v2186_v7 = vpop.f32.mrb[34].mxu0 }
 0x381   :  { %1831 = vst [vmem:[#allocation12 + $0x18] sm:$0xff] %v2186_v7  ;;  %v1477_v57 = vpop.f32.mrb[35].mxu0 }
 0x382   :  { %1829 = vst [vmem:[#allocation12 + $0x8] sm:$0xff] %v1477_v57  ;;  %v2217_v0 = vpop.f32.mrb[32].mxu1 }
 0x383   :  { %1846 = vst [vmem:[#allocation12 + $0x90] sm:$0xff] %v2217_v0  ;;  %v1571_v12 = vpop.f32.mrb[33].mxu1 }
 0x384   :  { %1844 = vst [vmem:[#allocation12 + $0x80] sm:$0xff] %v1571_v12  ;;  %v2218_v2 = vpop.f32.mrb[34].mxu1 }
 0x385   :  { %1847 = vst [vmem:[#allocation12 + $0x98] sm:$0xff] %v2218_v2  ;;  %v1574_v45 = vpop.f32.mrb[35].mxu1 }
 0x386   :  { %1845 = vst [vmem:[#allocation12 + $0x88] sm:$0xff] %v1574_v45 }
 0x38e   :  { %v2189_v56 = vpop.f32.mrb[36].mxu0 }
 0x38f   :  { %1834 = vst [vmem:[#allocation12 + $0x30] sm:$0xff] %v2189_v56  ;;  %v1490_v55 = vpop.f32.mrb[37].mxu0 }
 0x390   :  { %1832 = vst [vmem:[#allocation12 + $0x20] sm:$0xff] %v1490_v55  ;;  %v2190_v40 = vpop.f32.mrb[38].mxu0 }
 0x391   :  { %1835 = vst [vmem:[#allocation12 + $0x38] sm:$0xff] %v2190_v40  ;;  %v1493_v11 = vpop.f32.mrb[39].mxu0 }
 0x392   :  { %1833 = vst [vmem:[#allocation12 + $0x28] sm:$0xff] %v1493_v11  ;;  %v2221_v49 = vpop.f32.mrb[36].mxu1 }
 0x393   :  { %1850 = vst [vmem:[#allocation12 + $0xb0] sm:$0xff] %v2221_v49  ;;  %v1587_v50 = vpop.f32.mrb[37].mxu1 }
 0x394   :  { %1848 = vst [vmem:[#allocation12 + $0xa0] sm:$0xff] %v1587_v50  ;;  %v2222_v59 = vpop.f32.mrb[38].mxu1 }
 0x395   :  { %1851 = vst [vmem:[#allocation12 + $0xb8] sm:$0xff] %v2222_v59  ;;  %v1590_v20 = vpop.f32.mrb[39].mxu1 }
 0x396   :  { %1849 = vst [vmem:[#allocation12 + $0xa8] sm:$0xff] %v1590_v20 }
 0x39e   :  { %v2193_v61 = vpop.f32.mrb[40].mxu0 }
 0x39f   :  { %1838 = vst [vmem:[#allocation12 + $0x50] sm:$0xff] %v2193_v61  ;;  %v1506_v37 = vpop.f32.mrb[41].mxu0 }
 0x3a0   :  { %1836 = vst [vmem:[#allocation12 + $0x40] sm:$0xff] %v1506_v37  ;;  %v2194_v21 = vpop.f32.mrb[42].mxu0 }
 0x3a1   :  { %1839 = vst [vmem:[#allocation12 + $0x58] sm:$0xff] %v2194_v21  ;;  %v1509_v46 = vpop.f32.mrb[43].mxu0 }
 0x3a2   :  { %1837 = vst [vmem:[#allocation12 + $0x48] sm:$0xff] %v1509_v46  ;;  %v2225_v52 = vpop.f32.mrb[40].mxu1 }
 0x3a3   :  { %1854 = vst [vmem:[#allocation12 + $0xd0] sm:$0xff] %v2225_v52  ;;  %v1603_v35 = vpop.f32.mrb[41].mxu1 }
 0x3a4   :  { %1852 = vst [vmem:[#allocation12 + $0xc0] sm:$0xff] %v1603_v35  ;;  %v2226_v36 = vpop.f32.mrb[42].mxu1 }
 0x3a5   :  { %1855 = vst [vmem:[#allocation12 + $0xd8] sm:$0xff] %v2226_v36  ;;  %v1606_v15 = vpop.f32.mrb[43].mxu1 }
 0x3a6   :  { %1853 = vst [vmem:[#allocation12 + $0xc8] sm:$0xff] %v1606_v15 }
 0x3ae   :  { %v2197_v48 = vpop.f32.mrb[44].mxu0 }
 0x3af   :  { %1842 = vst [vmem:[#allocation12 + $0x70] sm:$0xff] %v2197_v48  ;;  %v1522_v23 = vpop.f32.mrb[45].mxu0 }
 0x3b0   :  { %1840 = vst [vmem:[#allocation12 + $0x60] sm:$0xff] %v1522_v23  ;;  %v2198_v17 = vpop.f32.mrb[46].mxu0 }
 0x3b1   :  { %1843 = vst [vmem:[#allocation12 + $0x78] sm:$0xff] %v2198_v17  ;;  %v1525_v43 = vpop.f32.mrb[47].mxu0 }
 0x3b2   :  { %1841 = vst [vmem:[#allocation12 + $0x68] sm:$0xff] %v1525_v43  ;;  %v2229_v19 = vpop.f32.mrb[44].mxu1 }
 0x3b3   :  { %1858 = vst [vmem:[#allocation12 + $0xf0] sm:$0xff] %v2229_v19  ;;  %v1619_v22 = vpop.f32.mrb[45].mxu1 }
 0x3b4   :  { %1856 = vst [vmem:[#allocation12 + $0xe0] sm:$0xff] %v1619_v22  ;;  %v2230_v28 = vpop.f32.mrb[46].mxu1 }
 0x3b5   :  { %1859 = vst [vmem:[#allocation12 + $0xf8] sm:$0xff] %v2230_v28  ;;  %v1622_v60 = vpop.f32.mrb[47].mxu1 }
 0x3b6   :  { %1857 = vst [vmem:[#allocation12 + $0xe8] sm:$0xff] %v1622_v60 }
 0x3be   :  { %v2249_v42 = vpop.f32.mrb[48].mxu0 }
 0x3bf   :  { %1862 = vst [vmem:[#allocation12 + $0x110] sm:$0xff] %v2249_v42  ;;  %v1668_v27 = vpop.f32.mrb[49].mxu0 }
 0x3c0   :  { %1860 = vst [vmem:[#allocation12 + $0x100] sm:$0xff] %v1668_v27  ;;  %v2250_v13 = vpop.f32.mrb[50].mxu0 }
 0x3c1   :  { %1863 = vst [vmem:[#allocation12 + $0x118] sm:$0xff] %v2250_v13  ;;  %v1671_v1 = vpop.f32.mrb[51].mxu0 }
 0x3c2   :  { %1861 = vst [vmem:[#allocation12 + $0x108] sm:$0xff] %v1671_v1  ;;  %v2281_v26 = vpop.f32.mrb[48].mxu1 }
 0x3c3   :  { %1878 = vst [vmem:[#allocation12 + $0x190] sm:$0xff] %v2281_v26  ;;  %v1765_v18 = vpop.f32.mrb[49].mxu1 }
 0x3c4   :  { %1876 = vst [vmem:[#allocation12 + $0x180] sm:$0xff] %v1765_v18  ;;  %v2282_v31 = vpop.f32.mrb[50].mxu1 }
 0x3c5   :  { %1879 = vst [vmem:[#allocation12 + $0x198] sm:$0xff] %v2282_v31  ;;  %v1768_v58 = vpop.f32.mrb[51].mxu1 }
 0x3c6   :  { %1877 = vst [vmem:[#allocation12 + $0x188] sm:$0xff] %v1768_v58 }
 0x3ce   :  { %v2253_v6 = vpop.f32.mrb[52].mxu0 }
 0x3cf   :  { %1866 = vst [vmem:[#allocation12 + $0x130] sm:$0xff] %v2253_v6  ;;  %v1684_v32 = vpop.f32.mrb[53].mxu0 }
 0x3d0   :  { %1864 = vst [vmem:[#allocation12 + $0x120] sm:$0xff] %v1684_v32  ;;  %v2254_v51 = vpop.f32.mrb[54].mxu0 }
 0x3d1   :  { %1867 = vst [vmem:[#allocation12 + $0x138] sm:$0xff] %v2254_v51  ;;  %v1687_v63 = vpop.f32.mrb[55].mxu0 }
 0x3d2   :  { %1865 = vst [vmem:[#allocation12 + $0x128] sm:$0xff] %v1687_v63  ;;  %v2285_v5 = vpop.f32.mrb[52].mxu1 }
 0x3d3   :  { %1882 = vst [vmem:[#allocation12 + $0x1b0] sm:$0xff] %v2285_v5  ;;  %v1781_v41 = vpop.f32.mrb[53].mxu1 }
 0x3d4   :  { %1880 = vst [vmem:[#allocation12 + $0x1a0] sm:$0xff] %v1781_v41  ;;  %v2286_v54 = vpop.f32.mrb[54].mxu1 }
 0x3d5   :  { %1883 = vst [vmem:[#allocation12 + $0x1b8] sm:$0xff] %v2286_v54  ;;  %v1784_v9 = vpop.f32.mrb[55].mxu1 }
 0x3d6   :  { %1881 = vst [vmem:[#allocation12 + $0x1a8] sm:$0xff] %v1784_v9 }
 0x3de   :  { %v2257_v4 = vpop.f32.mrb[56].mxu0 }
 0x3df   :  { %1870 = vst [vmem:[#allocation12 + $0x150] sm:$0xff] %v2257_v4  ;;  %v1700_v3 = vpop.f32.mrb[57].mxu0 }
 0x3e0   :  { %1868 = vst [vmem:[#allocation12 + $0x140] sm:$0xff] %v1700_v3  ;;  %v2258_v44 = vpop.f32.mrb[58].mxu0 }
 0x3e1   :  { %1871 = vst [vmem:[#allocation12 + $0x158] sm:$0xff] %v2258_v44  ;;  %v1703_v25 = vpop.f32.mrb[59].mxu0 }
 0x3e2   :  { %1869 = vst [vmem:[#allocation12 + $0x148] sm:$0xff] %v1703_v25  ;;  %v2289_v62 = vpop.f32.mrb[56].mxu1 }
 0x3e3   :  { %1886 = vst [vmem:[#allocation12 + $0x1d0] sm:$0xff] %v2289_v62  ;;  %v1797_v29 = vpop.f32.mrb[57].mxu1 }
 0x3e4   :  { %1884 = vst [vmem:[#allocation12 + $0x1c0] sm:$0xff] %v1797_v29  ;;  %v2290_v30 = vpop.f32.mrb[58].mxu1 }
 0x3e5   :  { %1887 = vst [vmem:[#allocation12 + $0x1d8] sm:$0xff] %v2290_v30  ;;  %v1800_v33 = vpop.f32.mrb[59].mxu1 }
 0x3e6   :  { %1885 = vst [vmem:[#allocation12 + $0x1c8] sm:$0xff] %v1800_v33 }
 0x3ea   :  { %v2261_v8 = vpop.f32.mrb[60].mxu0 }
 0x3eb   :  { %1874 = vst [vmem:[#allocation12 + $0x170] sm:$0xff] %v2261_v8  ;;  %v1716_v10 = vpop.f32.mrb[61].mxu0 }
 0x3ec   :  { %1872 = vst [vmem:[#allocation12 + $0x160] sm:$0xff] %v1716_v10  ;;  %v2262_v24 = vpop.f32.mrb[62].mxu0 }
 0x3ed   :  { %1875 = vst [vmem:[#allocation12 + $0x178] sm:$0xff] %v2262_v24  ;;  %v1719_v39 = vpop.f32.mrb[63].mxu0 }
 0x3ee   :  { %1873 = vst [vmem:[#allocation12 + $0x168] sm:$0xff] %v1719_v39 }
 0x3f1   :  { %v2293_v47 = vpop.f32.mrb[60].mxu1 }
 0x3f2   :  { %1890 = vst [vmem:[#allocation12 + $0x1f0] sm:$0xff] %v2293_v47  ;;  %v1813_v14 = vpop.f32.mrb[61].mxu1 }
 0x3f3   :  { %1888 = vst [vmem:[#allocation12 + $0x1e0] sm:$0xff] %v1813_v14  ;;  %v2294_v34 = vpop.f32.mrb[62].mxu1 }
 0x3f4   :  { %1891 = vst [vmem:[#allocation12 + $0x1f8] sm:$0xff] %v2294_v34  ;;  %v1816_v16 = vpop.f32.mrb[63].mxu1 }
 0x3f5   :  { %1889 = vst [vmem:[#allocation12 + $0x1e8] sm:$0xff] %v1816_v16 }
 0x3f6   :  { %2657 = shalt.err (!%p2654_p8)
}
 0x3f7   :  { %s2658_s0 = scalar_lea.hbm %s3429_s5, 8192 }
 0x3f8   :  { %p2659_p9 = scmp.ne.s32.totalorder %s3429_s5, %s2658_s0  ;;  %p2662_p10 = scmp.lt.u32.totalorder %s2658_s0, %s3429_s5 }
 0x3fa   :  { %p2664_p11 = pnand %p2662_p10, %p2659_p9 }
 0x3fc   :  { %2667 = shalt.err (!%p2664_p11)
}
 0x3fd   :  { %1903 = dma.vmem_to_hbm [thread:$0]  %s1898_s15, 8192, %s3429_s5, [#allocation6], %s2678_s29, %s2678_s29, %s2679_s30  }
 0x3fe   :  { %2674 = dma.done.wait [#allocation6], 8192  }
 0x3ff   :  { %2675 = vsyncadd [#allocation6], 4294959104 }
 0x400   :  { %1907 = vsyncpa [#allocation5], 1 }
 0x401   :  { %1908 = vsyncpa [#allocation8], 1 }
 0x402   :  { %1909 = vsyncpa [#allocation11], 1 }
 0x403   :  { %1910 = vsyncpa [#allocation6], 1 }

</bundles_post_ra>
